<compile_context>
chip_gen: v7x
topology: tpu7x:2x2x1
jax: 0.10.0
libtpu: 0.0.40
codegen_flags: <defaults>
</compile_context>

<pallas_src>
import numpy as np
import jax
import jax.numpy as jnp
from jax import lax
from jax.experimental import pallas as pl
from jax.experimental.pallas import tpu as pltpu

BLUR_K = 5          # blur kernel size (odd)
BLUR_SIGMA = 1.2    # gaussian sigma
SHOT_NOISE = 1e-2   # signal-dependent (shot) noise coefficient
READ_NOISE = 2e-3   # signal-independent (read) noise sigma

# counter-hash constants (lowbias32-style avalanche)
_M1 = np.uint32(0x7FEB352D)
_M2 = np.uint32(0x846CA68B)
_GOLD = np.uint32(0x9E3779B9)
_N_UNIFORMS = 12     # Irwin-Hall: sum of 12 U(0,1) - 6  ~  N(0,1)


def _gaussian_taps(k: int, sigma: float) -> np.ndarray:
    ax = np.arange(k, dtype=np.float64) - (k - 1) / 2.0
    g = np.exp(-(ax ** 2) / (2.0 * sigma ** 2))
    return (g / g.sum()).astype(np.float32)


def _fused_pool_matrices(g: np.ndarray, H: int, W: int):
    """Fold zero-'same' separable blur + 2x2 average binning into matrices.

    Returns R (Ho, H) and Cm (W, Wo) such that  pooled_plane = R @ plane @ Cm.
    """
    K = g.shape[0]
    pad = K // 2
    Ho, Wo = H // 2, W // 2
    Brow = np.zeros((H, H), np.float32)
    for i in range(H):
        for d in range(K):
            j = i + d - pad
            if 0 <= j < H:
                Brow[i, j] += g[d]
    Bcol = np.zeros((W, W), np.float32)
    for j in range(W):
        for d in range(K):
            w = j + d - pad
            if 0 <= w < W:
                Bcol[w, j] += g[d]
    Pr = np.zeros((Ho, H), np.float32)
    Pr[np.arange(Ho), 2 * np.arange(Ho)] = 0.5
    Pr[np.arange(Ho), 2 * np.arange(Ho) + 1] = 0.5
    Pc = np.zeros((W, Wo), np.float32)
    Pc[2 * np.arange(Wo), np.arange(Wo)] = 0.5
    Pc[2 * np.arange(Wo) + 1, np.arange(Wo)] = 0.5
    R = (Pr @ Brow).astype(np.float32)     # (Ho, H)
    Cm = (Bcol @ Pc).astype(np.float32)    # (W, Wo)
    return R, Cm


def _pick_planes_per_step(P, H, W, Ho, Wo, budget_bytes=40 << 20):
    """Largest divisor of P (capped at P//2 so the grid keeps >= 2 steps for
    v7x's two TensorCores / pipelining) whose per-step VMEM footprint fits the
    budget.  Charges double-buffering of every pipelined block plus the live
    per-plane 'rows' intermediate and the f32 epilogue temporaries.
    40 MiB default leaves headroom inside v7x's 64 MiB (v5e/v6e have 128 MiB)."""
    max_pp = max(1, P // 2)
    best = 1
    for pp in range(1, max_pp + 1):
        if P % pp:
            continue
        need = 2 * pp * H * W * 2              # x block (bf16), double-buffered
        need += 2 * pp * Ho * Wo * 4           # out block (f32), double-buffered
        need += 2 * (Ho * H * 2 + W * Wo * 2)  # R, Cm (bf16), double-buffered
        need += Ho * W * 4                     # per-plane 'rows' intermediate
        need += 4 * pp * Ho * Wo * 4           # pooled/sigma/z/acc temporaries
        if need <= budget_bytes:
            best = pp
    return best


def _hash_u32(x):
    """32-bit integer avalanche hash (vectorized, uint32 wrap-around)."""
    x = x ^ (x >> 16)
    x = x * _M1
    x = x ^ (x >> 15)
    x = x * _M2
    x = x ^ (x >> 16)
    return x


def _std_normal(counter_u32):
    """Approximate N(0,1) from a unique-per-element uint32 counter.

    Sum of 12 hashed U(0,1) draws minus 6: exact mean 0 / variance 1, support
    [-6, 6].  Uses only integer + f32 VPU ops, so it lowers on Mosaic and in
    interpret mode (unlike the hardware PRNG primitives)."""
    acc = None
    for k in range(_N_UNIFORMS):
        salt = np.uint32(((k + 1) * 0x9E3779B9) & 0xFFFFFFFF)
        bits = _hash_u32(counter_u32 + salt)
        u = (bits >> np.uint32(8)).astype(jnp.int32).astype(jnp.float32) \
            * np.float32(1.0 / (1 << 24))
        acc = u if acc is None else acc + u
    return acc - np.float32(_N_UNIFORMS / 2.0)


def _degrade_kernel(seed_ref, r_ref, cm_ref, x_ref, out_ref):
    """One group of PP planes per grid step.

    seed_ref : SMEM (1,) int32     PRNG seed (scalar prefetch)
    r_ref    : VMEM (Ho, H) bf16   fused row-blur + row-pool matrix (shared)
    cm_ref   : VMEM (W, Wo) bf16   fused col-blur + col-pool matrix (shared)
    x_ref    : VMEM (PP, H, W) bf16
    out_ref  : VMEM (PP, Ho, Wo) f32
    """
    PP, H, W = x_ref.shape
    Ho = r_ref.shape[0]
    Wo = cm_ref.shape[1]
    pid = pl.program_id(0)

    # blur + 2x2 binning == two bf16 MXU matmuls per plane (padding folded into
    # the matrices); shared R -> no redundant block-diagonal FLOPs.
    for p in range(PP):
        rows = jnp.dot(r_ref[...], x_ref[p],
                       preferred_element_type=jnp.float32)          # (Ho, W)
        out_ref[p] = jnp.dot(rows.astype(jnp.bfloat16), cm_ref[...],
                             preferred_element_type=jnp.float32)    # (Ho, Wo)

    # vectorized heteroscedastic-Gaussian epilogue over the whole block:
    # sigma = sqrt(shot*x + read^2), y = clip(x + z*sigma, 0, 1)
    pooled = out_ref[...]                                            # f32
    sigma = jnp.sqrt(SHOT_NOISE * jnp.maximum(pooled, 0.0)
                     + READ_NOISE * READ_NOISE)

    shp = (PP, Ho, Wo)
    plane_u = (lax.broadcasted_iota(jnp.int32, shp, 0) + pid * PP).astype(jnp.uint32)
    row_u = lax.broadcasted_iota(jnp.int32, shp, 1).astype(jnp.uint32)
    col_u = lax.broadcasted_iota(jnp.int32, shp, 2).astype(jnp.uint32)
    counter = (plane_u * np.uint32(Ho * Wo) + row_u * np.uint32(Wo) + col_u
               + seed_ref[0].astype(jnp.uint32) * _GOLD)
    z = _std_normal(counter)

    out_ref[...] = jnp.clip(pooled + z * sigma, 0.0, 1.0)


def rawsr_degradation(img, seed=0, planes_per_step=None):
    """img: (B, C, H, W) float in [0,1] -> (B, C, H//2, W//2) degraded image."""
    B, C, H, W = img.shape
    assert H % 2 == 0 and W % 2 == 0, "RAW 2x2 binning expects even H and W"
    P = B * C
    Ho, Wo = H // 2, W // 2
    if planes_per_step is None:
        planes_per_step = _pick_planes_per_step(P, H, W, Ho, Wo)
    PP = planes_per_step
    assert P % PP == 0, "planes_per_step must divide B*C"

    g = _gaussian_taps(BLUR_K, BLUR_SIGMA)
    R, Cm = _fused_pool_matrices(g, H, W)

    # bf16 matmul operands (f32 accumulation in-kernel).  In a real pipeline the
    # image batch would already live in bf16, making this cast free.
    x3d = img.reshape(P, H, W).astype(jnp.bfloat16)
    seed_arr = jnp.asarray([seed], dtype=jnp.int32)

    out3d = pl.pallas_call(
        _degrade_kernel,
        out_shape=jax.ShapeDtypeStruct((P, Ho, Wo), jnp.float32),
        grid_spec=pltpu.PrefetchScalarGridSpec(
            num_scalar_prefetch=1,
            grid=(P // PP,),
            in_specs=[
                # constant block index: re-DMA is skipped across steps
                pl.BlockSpec((Ho, H), lambda i, s: (0, 0)),        # R (shared)
                pl.BlockSpec((W, Wo), lambda i, s: (0, 0)),        # Cm (shared)
                pl.BlockSpec((PP, H, W), lambda i, s: (i, 0, 0)),  # planes
            ],
            out_specs=pl.BlockSpec((PP, Ho, Wo), lambda i, s: (i, 0, 0)),
        ),
        compiler_params=pltpu.CompilerParams(
            dimension_semantics=("parallel",),
            vmem_limit_bytes=48 * 1024 * 1024),
    )(seed_arr,
      jnp.asarray(R, dtype=jnp.bfloat16),
      jnp.asarray(Cm, dtype=jnp.bfloat16),
      x3d)
    return out3d.reshape(B, C, Ho, Wo)


def _reference_pooled(img, g):
    """Pure-JAX blur (zero 'same' pad, full 2-D taps) + 2x2 mean (no noise)."""
    K = g.shape[0]
    pad = K // 2
    B, C, H, W = img.shape
    k2 = np.outer(g, g).astype(np.float32)
    xpad = jnp.pad(img, ((0, 0), (0, 0), (pad, pad), (pad, pad)))
    acc = jnp.zeros_like(img)
    for di in range(K):
        for dj in range(K):
            acc = acc + xpad[:, :, di:di + H, dj:dj + W] * float(k2[di, dj])
    return acc.reshape(B, C, H // 2, 2, W // 2, 2).mean(axis=(3, 5))


if __name__ == "__main__":
    B, C, H, W = 2, 4, 16, 16          # packed 4-channel RAW planes
    Ho, Wo = H // 2, W // 2
    key = jax.random.PRNGKey(0)
    img = jax.random.uniform(key, (B, C, H, W), dtype=jnp.float32)

    g = _gaussian_taps(BLUR_K, BLUR_SIGMA)
    R, Cm = _fused_pool_matrices(g, H, W)

    # 1) exactness of the fused blur+pool matrices vs an independent tap-loop ref
    pooled_ref = _reference_pooled(img, g)
    pooled_mat = jnp.einsum("oh,bchw,wv->bcov",
                            jnp.asarray(R), img, jnp.asarray(Cm))
    np.testing.assert_allclose(np.asarray(pooled_mat), np.asarray(pooled_ref),
                               rtol=1e-4, atol=1e-5)

    # 2) run the Pallas kernel (auto planes_per_step -> grid of >= 2 steps)
    out = rawsr_degradation(img, seed=0)
    out = jax.block_until_ready(out)
    assert out.shape == (B, C, Ho, Wo)

    o = np.asarray(out)
    pooled = np.asarray(pooled_ref)
    sigma = np.sqrt(SHOT_NOISE * np.maximum(pooled, 0.0) + READ_NOISE ** 2)
    assert np.all(np.isfinite(o)) and o.min() >= 0.0 and o.max() <= 1.0
    # per-pixel bound: Irwin-Hall |z| <= 6; 0.05 slack covers bf16 matmuls
    assert np.all(np.abs(o - np.clip(pooled, 0.0, 1.0)) <= 6.0 * sigma + 0.05)
    # implied in-kernel noise on non-clipped pixels is ~ N(0, 1)
    m = (o > 0.0) & (o < 1.0)
    z = (o[m] - pooled[m]) / sigma[m]
    assert z.size > 100
    assert abs(float(z.mean())) < 0.25
    assert 0.75 < float(z.std()) < 1.25
    # independent noise field per plane (counter includes the global plane id)
    z_all = ((o - pooled) / sigma).reshape(B * C, Ho, Wo)
    assert float(np.abs(z_all[:C] - z_all[C:]).mean()) > 0.1

    print("KERNEL_OK")
</pallas_src>

<mosaic_0001>
module attributes {stable_mosaic.version = 11 : i64} {
  func.func @_degrade_kernel(%arg0: i32, %arg1: memref<1xi32, #tpu.memory_space<smem>>, %arg2: memref<8x16xbf16, #tpu.memory_space<vmem>>, %arg3: memref<16x8xbf16, #tpu.memory_space<vmem>>, %arg4: memref<4x16x16xbf16, #tpu.memory_space<vmem>>, %arg5: memref<4x8x8xf32, #tpu.memory_space<vmem>>) attributes {dimension_semantics = [#tpu.dimension_semantics<parallel>], iteration_bounds = array<i64: 2>, scalar_prefetch = 1 : i64, scratch_operands = 0 : i64, tpu.core_type = #tpu.core_type<tc>, window_params = [{pipeline_mode = #tpu.pipeline_mode<synchronous>, transform_indices = @transform_0, window_bounds = array<i64: 8, 16>}, {pipeline_mode = #tpu.pipeline_mode<synchronous>, transform_indices = @transform_1, window_bounds = array<i64: 16, 8>}, {transform_indices = @transform_2, window_bounds = array<i64: 4, 16, 16>}, {transform_indices = @transform_3, window_bounds = array<i64: 4, 8, 8>}]} {
    %c0 = arith.constant 0 : index
    %c0_0 = arith.constant 0 : index
    %0 = vector.load %arg2[%c0, %c0_0] : memref<8x16xbf16, #tpu.memory_space<vmem>>, vector<8x16xbf16>
    %c0_1 = arith.constant 0 : index
    %c0_2 = arith.constant 0 : index
    %c0_3 = arith.constant 0 : index
    %1 = vector.load %arg4[%c0_1, %c0_2, %c0_3] : memref<4x16x16xbf16, #tpu.memory_space<vmem>>, vector<1x16x16xbf16>
    %2 = vector.shape_cast %1 : vector<1x16x16xbf16> to vector<16x16xbf16>
    %cst = arith.constant dense<0.000000e+00> : vector<8x16xf32>
    %3 = tpu.matmul %0, %2, %cst {dimension_numbers = #tpu.dot_dimension_numbers<[1], [0], [0], [1], [0, 0, 1, 1], [], []>} : vector<8x16xbf16>, vector<16x16xbf16>, vector<8x16xf32> -> vector<8x16xf32>
    %4 = arith.truncf %3 : vector<8x16xf32> to vector<8x16xbf16>
    %c0_4 = arith.constant 0 : index
    %c0_5 = arith.constant 0 : index
    %5 = vector.load %arg3[%c0_4, %c0_5] : memref<16x8xbf16, #tpu.memory_space<vmem>>, vector<16x8xbf16>
    %cst_6 = arith.constant dense<0.000000e+00> : vector<8x8xf32>
    %6 = tpu.matmul %4, %5, %cst_6 {dimension_numbers = #tpu.dot_dimension_numbers<[1], [0], [0], [1], [0, 0, 1, 1], [], []>} : vector<8x16xbf16>, vector<16x8xbf16>, vector<8x8xf32> -> vector<8x8xf32>
    %c0_7 = arith.constant 0 : index
    %c0_8 = arith.constant 0 : index
    %c0_9 = arith.constant 0 : index
    %7 = vector.load %arg5[%c0_7, %c0_8, %c0_9] : memref<4x8x8xf32, #tpu.memory_space<vmem>>, vector<1x8x8xf32>
    %8 = vector.shape_cast %7 : vector<1x8x8xf32> to vector<8x8xf32>
    %9 = vector.shape_cast %6 : vector<8x8xf32> to vector<1x8x8xf32>
    tpu.vector_store %arg5[%c0_7, %c0_8, %c0_9], %9 {strides = array<i32>} : memref<4x8x8xf32, #tpu.memory_space<vmem>>, vector<1x8x8xf32>,
    %c0_10 = arith.constant 0 : index
    %c0_11 = arith.constant 0 : index
    %10 = vector.load %arg2[%c0_10, %c0_11] : memref<8x16xbf16, #tpu.memory_space<vmem>>, vector<8x16xbf16>
    %c1 = arith.constant 1 : index
    %c0_12 = arith.constant 0 : index
    %c0_13 = arith.constant 0 : index
    %11 = vector.load %arg4[%c1, %c0_12, %c0_13] : memref<4x16x16xbf16, #tpu.memory_space<vmem>>, vector<1x16x16xbf16>
    %12 = vector.shape_cast %11 : vector<1x16x16xbf16> to vector<16x16xbf16>
    %cst_14 = arith.constant dense<0.000000e+00> : vector<8x16xf32>
    %13 = tpu.matmul %10, %12, %cst_14 {dimension_numbers = #tpu.dot_dimension_numbers<[1], [0], [0], [1], [0, 0, 1, 1], [], []>} : vector<8x16xbf16>, vector<16x16xbf16>, vector<8x16xf32> -> vector<8x16xf32>
    %14 = arith.truncf %13 : vector<8x16xf32> to vector<8x16xbf16>
    %c0_15 = arith.constant 0 : index
    %c0_16 = arith.constant 0 : index
    %15 = vector.load %arg3[%c0_15, %c0_16] : memref<16x8xbf16, #tpu.memory_space<vmem>>, vector<16x8xbf16>
    %cst_17 = arith.constant dense<0.000000e+00> : vector<8x8xf32>
    %16 = tpu.matmul %14, %15, %cst_17 {dimension_numbers = #tpu.dot_dimension_numbers<[1], [0], [0], [1], [0, 0, 1, 1], [], []>} : vector<8x16xbf16>, vector<16x8xbf16>, vector<8x8xf32> -> vector<8x8xf32>
    %c1_18 = arith.constant 1 : index
    %c0_19 = arith.constant 0 : index
    %c0_20 = arith.constant 0 : index
    %17 = vector.load %arg5[%c1_18, %c0_19, %c0_20] : memref<4x8x8xf32, #tpu.memory_space<vmem>>, vector<1x8x8xf32>
    %18 = vector.shape_cast %17 : vector<1x8x8xf32> to vector<8x8xf32>
    %19 = vector.shape_cast %16 : vector<8x8xf32> to vector<1x8x8xf32>
    tpu.vector_store %arg5[%c1_18, %c0_19, %c0_20], %19 {strides = array<i32>} : memref<4x8x8xf32, #tpu.memory_space<vmem>>, vector<1x8x8xf32>,
    %c0_21 = arith.constant 0 : index
    %c0_22 = arith.constant 0 : index
    %20 = vector.load %arg2[%c0_21, %c0_22] : memref<8x16xbf16, #tpu.memory_space<vmem>>, vector<8x16xbf16>
    %c2 = arith.constant 2 : index
    %c0_23 = arith.constant 0 : index
    %c0_24 = arith.constant 0 : index
    %21 = vector.load %arg4[%c2, %c0_23, %c0_24] : memref<4x16x16xbf16, #tpu.memory_space<vmem>>, vector<1x16x16xbf16>
    %22 = vector.shape_cast %21 : vector<1x16x16xbf16> to vector<16x16xbf16>
    %cst_25 = arith.constant dense<0.000000e+00> : vector<8x16xf32>
    %23 = tpu.matmul %20, %22, %cst_25 {dimension_numbers = #tpu.dot_dimension_numbers<[1], [0], [0], [1], [0, 0, 1, 1], [], []>} : vector<8x16xbf16>, vector<16x16xbf16>, vector<8x16xf32> -> vector<8x16xf32>
    %24 = arith.truncf %23 : vector<8x16xf32> to vector<8x16xbf16>
    %c0_26 = arith.constant 0 : index
    %c0_27 = arith.constant 0 : index
    %25 = vector.load %arg3[%c0_26, %c0_27] : memref<16x8xbf16, #tpu.memory_space<vmem>>, vector<16x8xbf16>
    %cst_28 = arith.constant dense<0.000000e+00> : vector<8x8xf32>
    %26 = tpu.matmul %24, %25, %cst_28 {dimension_numbers = #tpu.dot_dimension_numbers<[1], [0], [0], [1], [0, 0, 1, 1], [], []>} : vector<8x16xbf16>, vector<16x8xbf16>, vector<8x8xf32> -> vector<8x8xf32>
    %c2_29 = arith.constant 2 : index
    %c0_30 = arith.constant 0 : index
    %c0_31 = arith.constant 0 : index
    %27 = vector.load %arg5[%c2_29, %c0_30, %c0_31] : memref<4x8x8xf32, #tpu.memory_space<vmem>>, vector<1x8x8xf32>
    %28 = vector.shape_cast %27 : vector<1x8x8xf32> to vector<8x8xf32>
    %29 = vector.shape_cast %26 : vector<8x8xf32> to vector<1x8x8xf32>
    tpu.vector_store %arg5[%c2_29, %c0_30, %c0_31], %29 {strides = array<i32>} : memref<4x8x8xf32, #tpu.memory_space<vmem>>, vector<1x8x8xf32>,
    %c0_32 = arith.constant 0 : index
    %c0_33 = arith.constant 0 : index
    %30 = vector.load %arg2[%c0_32, %c0_33] : memref<8x16xbf16, #tpu.memory_space<vmem>>, vector<8x16xbf16>
    %c3 = arith.constant 3 : index
    %c0_34 = arith.constant 0 : index
    %c0_35 = arith.constant 0 : index
    %31 = vector.load %arg4[%c3, %c0_34, %c0_35] : memref<4x16x16xbf16, #tpu.memory_space<vmem>>, vector<1x16x16xbf16>
    %32 = vector.shape_cast %31 : vector<1x16x16xbf16> to vector<16x16xbf16>
    %cst_36 = arith.constant dense<0.000000e+00> : vector<8x16xf32>
    %33 = tpu.matmul %30, %32, %cst_36 {dimension_numbers = #tpu.dot_dimension_numbers<[1], [0], [0], [1], [0, 0, 1, 1], [], []>} : vector<8x16xbf16>, vector<16x16xbf16>, vector<8x16xf32> -> vector<8x16xf32>
    %34 = arith.truncf %33 : vector<8x16xf32> to vector<8x16xbf16>
    %c0_37 = arith.constant 0 : index
    %c0_38 = arith.constant 0 : index
    %35 = vector.load %arg3[%c0_37, %c0_38] : memref<16x8xbf16, #tpu.memory_space<vmem>>, vector<16x8xbf16>
    %cst_39 = arith.constant dense<0.000000e+00> : vector<8x8xf32>
    %36 = tpu.matmul %34, %35, %cst_39 {dimension_numbers = #tpu.dot_dimension_numbers<[1], [0], [0], [1], [0, 0, 1, 1], [], []>} : vector<8x16xbf16>, vector<16x8xbf16>, vector<8x8xf32> -> vector<8x8xf32>
    %c3_40 = arith.constant 3 : index
    %c0_41 = arith.constant 0 : index
    %c0_42 = arith.constant 0 : index
    %37 = vector.load %arg5[%c3_40, %c0_41, %c0_42] : memref<4x8x8xf32, #tpu.memory_space<vmem>>, vector<1x8x8xf32>
    %38 = vector.shape_cast %37 : vector<1x8x8xf32> to vector<8x8xf32>
    %39 = vector.shape_cast %36 : vector<8x8xf32> to vector<1x8x8xf32>
    tpu.vector_store %arg5[%c3_40, %c0_41, %c0_42], %39 {strides = array<i32>} : memref<4x8x8xf32, #tpu.memory_space<vmem>>, vector<1x8x8xf32>,
    %c0_43 = arith.constant 0 : index
    %c0_44 = arith.constant 0 : index
    %c0_45 = arith.constant 0 : index
    %40 = vector.load %arg5[%c0_43, %c0_44, %c0_45] : memref<4x8x8xf32, #tpu.memory_space<vmem>>, vector<4x8x8xf32>
    %cst_46 = arith.constant 0.000000e+00 : f32
    %41 = vector.broadcast %cst_46 : f32 to vector<4x8x8xf32>
    %42 = arith.maximumf %40, %41 : vector<4x8x8xf32>
    %cst_47 = arith.constant 0.00999999977 : f32
    %43 = vector.broadcast %cst_47 : f32 to vector<4x8x8xf32>
    %44 = arith.mulf %43, %42 : vector<4x8x8xf32>
    %cst_48 = arith.constant 4.000000e-06 : f32
    %45 = vector.broadcast %cst_48 : f32 to vector<4x8x8xf32>
    %46 = arith.addf %44, %45 : vector<4x8x8xf32>
    %47 = math.sqrt %46 : vector<4x8x8xf32>
    %48 = tpu.iota {dimensions = array<i32: 0>} : vector<4x8x8xi32>
    %c4_i32 = arith.constant 4 : i32
    %49 = arith.muli %arg0, %c4_i32 : i32
    %50 = vector.broadcast %49 : i32 to vector<4x8x8xi32>
    %51 = arith.addi %48, %50 : vector<4x8x8xi32>
    %52 = tpu.iota {dimensions = array<i32: 1>} : vector<4x8x8xi32>
    %53 = tpu.iota {dimensions = array<i32: 2>} : vector<4x8x8xi32>
    %c64_i32 = arith.constant 64 : i32
    %54 = vector.broadcast %c64_i32 : i32 to vector<4x8x8xi32>
    %55 = arith.muli %51, %54 : vector<4x8x8xi32>
    %c8_i32 = arith.constant 8 : i32
    %56 = vector.broadcast %c8_i32 : i32 to vector<4x8x8xi32>
    %57 = arith.muli %52, %56 : vector<4x8x8xi32>
    %58 = arith.addi %55, %57 : vector<4x8x8xi32>
    %59 = arith.addi %58, %53 : vector<4x8x8xi32>
    %c0_49 = arith.constant 0 : index
    %60 = memref.load %arg1[%c0_49] : memref<1xi32, #tpu.memory_space<smem>>
    %c-1640531527_i32 = arith.constant -1640531527 : i32
    %61 = arith.muli %60, %c-1640531527_i32 : i32
    %62 = vector.broadcast %61 : i32 to vector<4x8x8xi32>
    %63 = arith.addi %59, %62 : vector<4x8x8xi32>
    %c-1640531527_i32_50 = arith.constant -1640531527 : i32
    %64 = vector.broadcast %c-1640531527_i32_50 : i32 to vector<4x8x8xi32>
    %65 = arith.addi %63, %64 : vector<4x8x8xi32>
    %c16_i32 = arith.constant 16 : i32
    %66 = vector.broadcast %c16_i32 : i32 to vector<4x8x8xi32>
    %67 = arith.shrui %65, %66 : vector<4x8x8xi32>
    %68 = arith.xori %65, %67 : vector<4x8x8xi32>
    %c2146121005_i32 = arith.constant 2146121005 : i32
    %69 = vector.broadcast %c2146121005_i32 : i32 to vector<4x8x8xi32>
    %70 = arith.muli %68, %69 : vector<4x8x8xi32>
    %c15_i32 = arith.constant 15 : i32
    %71 = vector.broadcast %c15_i32 : i32 to vector<4x8x8xi32>
    %72 = arith.shrui %70, %71 : vector<4x8x8xi32>
    %73 = arith.xori %70, %72 : vector<4x8x8xi32>
    %c-2073254261_i32 = arith.constant -2073254261 : i32
    %74 = vector.broadcast %c-2073254261_i32 : i32 to vector<4x8x8xi32>
    %75 = arith.muli %73, %74 : vector<4x8x8xi32>
    %c16_i32_51 = arith.constant 16 : i32
    %76 = vector.broadcast %c16_i32_51 : i32 to vector<4x8x8xi32>
    %77 = arith.shrui %75, %76 : vector<4x8x8xi32>
    %78 = arith.xori %75, %77 : vector<4x8x8xi32>
    %c8_i32_52 = arith.constant 8 : i32
    %79 = vector.broadcast %c8_i32_52 : i32 to vector<4x8x8xi32>
    %80 = arith.shrui %78, %79 : vector<4x8x8xi32>
    %81 = arith.sitofp %80 : vector<4x8x8xi32> to vector<4x8x8xf32>
    %cst_53 = arith.constant 5.96046448E-8 : f32
    %82 = vector.broadcast %cst_53 : f32 to vector<4x8x8xf32>
    %83 = arith.mulf %81, %82 : vector<4x8x8xf32>
    %c1013904242_i32 = arith.constant 1013904242 : i32
    %84 = vector.broadcast %c1013904242_i32 : i32 to vector<4x8x8xi32>
    %85 = arith.addi %63, %84 : vector<4x8x8xi32>
    %c16_i32_54 = arith.constant 16 : i32
    %86 = vector.broadcast %c16_i32_54 : i32 to vector<4x8x8xi32>
    %87 = arith.shrui %85, %86 : vector<4x8x8xi32>
    %88 = arith.xori %85, %87 : vector<4x8x8xi32>
    %c2146121005_i32_55 = arith.constant 2146121005 : i32
    %89 = vector.broadcast %c2146121005_i32_55 : i32 to vector<4x8x8xi32>
    %90 = arith.muli %88, %89 : vector<4x8x8xi32>
    %c15_i32_56 = arith.constant 15 : i32
    %91 = vector.broadcast %c15_i32_56 : i32 to vector<4x8x8xi32>
    %92 = arith.shrui %90, %91 : vector<4x8x8xi32>
    %93 = arith.xori %90, %92 : vector<4x8x8xi32>
    %c-2073254261_i32_57 = arith.constant -2073254261 : i32
    %94 = vector.broadcast %c-2073254261_i32_57 : i32 to vector<4x8x8xi32>
    %95 = arith.muli %93, %94 : vector<4x8x8xi32>
    %c16_i32_58 = arith.constant 16 : i32
    %96 = vector.broadcast %c16_i32_58 : i32 to vector<4x8x8xi32>
    %97 = arith.shrui %95, %96 : vector<4x8x8xi32>
    %98 = arith.xori %95, %97 : vector<4x8x8xi32>
    %c8_i32_59 = arith.constant 8 : i32
    %99 = vector.broadcast %c8_i32_59 : i32 to vector<4x8x8xi32>
    %100 = arith.shrui %98, %99 : vector<4x8x8xi32>
    %101 = arith.sitofp %100 : vector<4x8x8xi32> to vector<4x8x8xf32>
    %cst_60 = arith.constant 5.96046448E-8 : f32
    %102 = vector.broadcast %cst_60 : f32 to vector<4x8x8xf32>
    %103 = arith.mulf %101, %102 : vector<4x8x8xf32>
    %104 = arith.addf %83, %103 : vector<4x8x8xf32>
    %c-626627285_i32 = arith.constant -626627285 : i32
    %105 = vector.broadcast %c-626627285_i32 : i32 to vector<4x8x8xi32>
    %106 = arith.addi %63, %105 : vector<4x8x8xi32>
    %c16_i32_61 = arith.constant 16 : i32
    %107 = vector.broadcast %c16_i32_61 : i32 to vector<4x8x8xi32>
    %108 = arith.shrui %106, %107 : vector<4x8x8xi32>
    %109 = arith.xori %106, %108 : vector<4x8x8xi32>
    %c2146121005_i32_62 = arith.constant 2146121005 : i32
    %110 = vector.broadcast %c2146121005_i32_62 : i32 to vector<4x8x8xi32>
    %111 = arith.muli %109, %110 : vector<4x8x8xi32>
    %c15_i32_63 = arith.constant 15 : i32
    %112 = vector.broadcast %c15_i32_63 : i32 to vector<4x8x8xi32>
    %113 = arith.shrui %111, %112 : vector<4x8x8xi32>
    %114 = arith.xori %111, %113 : vector<4x8x8xi32>
    %c-2073254261_i32_64 = arith.constant -2073254261 : i32
    %115 = vector.broadcast %c-2073254261_i32_64 : i32 to vector<4x8x8xi32>
    %116 = arith.muli %114, %115 : vector<4x8x8xi32>
    %c16_i32_65 = arith.constant 16 : i32
    %117 = vector.broadcast %c16_i32_65 : i32 to vector<4x8x8xi32>
    %118 = arith.shrui %116, %117 : vector<4x8x8xi32>
    %119 = arith.xori %116, %118 : vector<4x8x8xi32>
    %c8_i32_66 = arith.constant 8 : i32
    %120 = vector.broadcast %c8_i32_66 : i32 to vector<4x8x8xi32>
    %121 = arith.shrui %119, %120 : vector<4x8x8xi32>
    %122 = arith.sitofp %121 : vector<4x8x8xi32> to vector<4x8x8xf32>
    %cst_67 = arith.constant 5.96046448E-8 : f32
    %123 = vector.broadcast %cst_67 : f32 to vector<4x8x8xf32>
    %124 = arith.mulf %122, %123 : vector<4x8x8xf32>
    %125 = arith.addf %104, %124 : vector<4x8x8xf32>
    %c2027808484_i32 = arith.constant 2027808484 : i32
    %126 = vector.broadcast %c2027808484_i32 : i32 to vector<4x8x8xi32>
    %127 = arith.addi %63, %126 : vector<4x8x8xi32>
    %c16_i32_68 = arith.constant 16 : i32
    %128 = vector.broadcast %c16_i32_68 : i32 to vector<4x8x8xi32>
    %129 = arith.shrui %127, %128 : vector<4x8x8xi32>
    %130 = arith.xori %127, %129 : vector<4x8x8xi32>
    %c2146121005_i32_69 = arith.constant 2146121005 : i32
    %131 = vector.broadcast %c2146121005_i32_69 : i32 to vector<4x8x8xi32>
    %132 = arith.muli %130, %131 : vector<4x8x8xi32>
    %c15_i32_70 = arith.constant 15 : i32
    %133 = vector.broadcast %c15_i32_70 : i32 to vector<4x8x8xi32>
    %134 = arith.shrui %132, %133 : vector<4x8x8xi32>
    %135 = arith.xori %132, %134 : vector<4x8x8xi32>
    %c-2073254261_i32_71 = arith.constant -2073254261 : i32
    %136 = vector.broadcast %c-2073254261_i32_71 : i32 to vector<4x8x8xi32>
    %137 = arith.muli %135, %136 : vector<4x8x8xi32>
    %c16_i32_72 = arith.constant 16 : i32
    %138 = vector.broadcast %c16_i32_72 : i32 to vector<4x8x8xi32>
    %139 = arith.shrui %137, %138 : vector<4x8x8xi32>
    %140 = arith.xori %137, %139 : vector<4x8x8xi32>
    %c8_i32_73 = arith.constant 8 : i32
    %141 = vector.broadcast %c8_i32_73 : i32 to vector<4x8x8xi32>
    %142 = arith.shrui %140, %141 : vector<4x8x8xi32>
    %143 = arith.sitofp %142 : vector<4x8x8xi32> to vector<4x8x8xf32>
    %cst_74 = arith.constant 5.96046448E-8 : f32
    %144 = vector.broadcast %cst_74 : f32 to vector<4x8x8xf32>
    %145 = arith.mulf %143, %144 : vector<4x8x8xf32>
    %146 = arith.addf %125, %145 : vector<4x8x8xf32>
    %c387276957_i32 = arith.constant 387276957 : i32
    %147 = vector.broadcast %c387276957_i32 : i32 to vector<4x8x8xi32>
    %148 = arith.addi %63, %147 : vector<4x8x8xi32>
    %c16_i32_75 = arith.constant 16 : i32
    %149 = vector.broadcast %c16_i32_75 : i32 to vector<4x8x8xi32>
    %150 = arith.shrui %148, %149 : vector<4x8x8xi32>
    %151 = arith.xori %148, %150 : vector<4x8x8xi32>
    %c2146121005_i32_76 = arith.constant 2146121005 : i32
    %152 = vector.broadcast %c2146121005_i32_76 : i32 to vector<4x8x8xi32>
    %153 = arith.muli %151, %152 : vector<4x8x8xi32>
    %c15_i32_77 = arith.constant 15 : i32
    %154 = vector.broadcast %c15_i32_77 : i32 to vector<4x8x8xi32>
    %155 = arith.shrui %153, %154 : vector<4x8x8xi32>
    %156 = arith.xori %153, %155 : vector<4x8x8xi32>
    %c-2073254261_i32_78 = arith.constant -2073254261 : i32
    %157 = vector.broadcast %c-2073254261_i32_78 : i32 to vector<4x8x8xi32>
    %158 = arith.muli %156, %157 : vector<4x8x8xi32>
    %c16_i32_79 = arith.constant 16 : i32
    %159 = vector.broadcast %c16_i32_79 : i32 to vector<4x8x8xi32>
    %160 = arith.shrui %158, %159 : vector<4x8x8xi32>
    %161 = arith.xori %158, %160 : vector<4x8x8xi32>
    %c8_i32_80 = arith.constant 8 : i32
    %162 = vector.broadcast %c8_i32_80 : i32 to vector<4x8x8xi32>
    %163 = arith.shrui %161, %162 : vector<4x8x8xi32>
    %164 = arith.sitofp %163 : vector<4x8x8xi32> to vector<4x8x8xf32>
    %cst_81 = arith.constant 5.96046448E-8 : f32
    %165 = vector.broadcast %cst_81 : f32 to vector<4x8x8xf32>
    %166 = arith.mulf %164, %165 : vector<4x8x8xf32>
    %167 = arith.addf %146, %166 : vector<4x8x8xf32>
    %c-1253254570_i32 = arith.constant -1253254570 : i32
    %168 = vector.broadcast %c-1253254570_i32 : i32 to vector<4x8x8xi32>
    %169 = arith.addi %63, %168 : vector<4x8x8xi32>
    %c16_i32_82 = arith.constant 16 : i32
    %170 = vector.broadcast %c16_i32_82 : i32 to vector<4x8x8xi32>
    %171 = arith.shrui %169, %170 : vector<4x8x8xi32>
    %172 = arith.xori %169, %171 : vector<4x8x8xi32>
    %c2146121005_i32_83 = arith.constant 2146121005 : i32
    %173 = vector.broadcast %c2146121005_i32_83 : i32 to vector<4x8x8xi32>
    %174 = arith.muli %172, %173 : vector<4x8x8xi32>
    %c15_i32_84 = arith.constant 15 : i32
    %175 = vector.broadcast %c15_i32_84 : i32 to vector<4x8x8xi32>
    %176 = arith.shrui %174, %175 : vector<4x8x8xi32>
    %177 = arith.xori %174, %176 : vector<4x8x8xi32>
    %c-2073254261_i32_85 = arith.constant -2073254261 : i32
    %178 = vector.broadcast %c-2073254261_i32_85 : i32 to vector<4x8x8xi32>
    %179 = arith.muli %177, %178 : vector<4x8x8xi32>
    %c16_i32_86 = arith.constant 16 : i32
    %180 = vector.broadcast %c16_i32_86 : i32 to vector<4x8x8xi32>
    %181 = arith.shrui %179, %180 : vector<4x8x8xi32>
    %182 = arith.xori %179, %181 : vector<4x8x8xi32>
    %c8_i32_87 = arith.constant 8 : i32
    %183 = vector.broadcast %c8_i32_87 : i32 to vector<4x8x8xi32>
    %184 = arith.shrui %182, %183 : vector<4x8x8xi32>
    %185 = arith.sitofp %184 : vector<4x8x8xi32> to vector<4x8x8xf32>
    %cst_88 = arith.constant 5.96046448E-8 : f32
    %186 = vector.broadcast %cst_88 : f32 to vector<4x8x8xf32>
    %187 = arith.mulf %185, %186 : vector<4x8x8xf32>
    %188 = arith.addf %167, %187 : vector<4x8x8xf32>
    %c1401181199_i32 = arith.constant 1401181199 : i32
    %189 = vector.broadcast %c1401181199_i32 : i32 to vector<4x8x8xi32>
    %190 = arith.addi %63, %189 : vector<4x8x8xi32>
    %c16_i32_89 = arith.constant 16 : i32
    %191 = vector.broadcast %c16_i32_89 : i32 to vector<4x8x8xi32>
    %192 = arith.shrui %190, %191 : vector<4x8x8xi32>
    %193 = arith.xori %190, %192 : vector<4x8x8xi32>
    %c2146121005_i32_90 = arith.constant 2146121005 : i32
    %194 = vector.broadcast %c2146121005_i32_90 : i32 to vector<4x8x8xi32>
    %195 = arith.muli %193, %194 : vector<4x8x8xi32>
    %c15_i32_91 = arith.constant 15 : i32
    %196 = vector.broadcast %c15_i32_91 : i32 to vector<4x8x8xi32>
    %197 = arith.shrui %195, %196 : vector<4x8x8xi32>
    %198 = arith.xori %195, %197 : vector<4x8x8xi32>
    %c-2073254261_i32_92 = arith.constant -2073254261 : i32
    %199 = vector.broadcast %c-2073254261_i32_92 : i32 to vector<4x8x8xi32>
    %200 = arith.muli %198, %199 : vector<4x8x8xi32>
    %c16_i32_93 = arith.constant 16 : i32
    %201 = vector.broadcast %c16_i32_93 : i32 to vector<4x8x8xi32>
    %202 = arith.shrui %200, %201 : vector<4x8x8xi32>
    %203 = arith.xori %200, %202 : vector<4x8x8xi32>
    %c8_i32_94 = arith.constant 8 : i32
    %204 = vector.broadcast %c8_i32_94 : i32 to vector<4x8x8xi32>
    %205 = arith.shrui %203, %204 : vector<4x8x8xi32>
    %206 = arith.sitofp %205 : vector<4x8x8xi32> to vector<4x8x8xf32>
    %cst_95 = arith.constant 5.96046448E-8 : f32
    %207 = vector.broadcast %cst_95 : f32 to vector<4x8x8xf32>
    %208 = arith.mulf %206, %207 : vector<4x8x8xf32>
    %209 = arith.addf %188, %208 : vector<4x8x8xf32>
    %c-239350328_i32 = arith.constant -239350328 : i32
    %210 = vector.broadcast %c-239350328_i32 : i32 to vector<4x8x8xi32>
    %211 = arith.addi %63, %210 : vector<4x8x8xi32>
    %c16_i32_96 = arith.constant 16 : i32
    %212 = vector.broadcast %c16_i32_96 : i32 to vector<4x8x8xi32>
    %213 = arith.shrui %211, %212 : vector<4x8x8xi32>
    %214 = arith.xori %211, %213 : vector<4x8x8xi32>
    %c2146121005_i32_97 = arith.constant 2146121005 : i32
    %215 = vector.broadcast %c2146121005_i32_97 : i32 to vector<4x8x8xi32>
    %216 = arith.muli %214, %215 : vector<4x8x8xi32>
    %c15_i32_98 = arith.constant 15 : i32
    %217 = vector.broadcast %c15_i32_98 : i32 to vector<4x8x8xi32>
    %218 = arith.shrui %216, %217 : vector<4x8x8xi32>
    %219 = arith.xori %216, %218 : vector<4x8x8xi32>
    %c-2073254261_i32_99 = arith.constant -2073254261 : i32
    %220 = vector.broadcast %c-2073254261_i32_99 : i32 to vector<4x8x8xi32>
    %221 = arith.muli %219, %220 : vector<4x8x8xi32>
    %c16_i32_100 = arith.constant 16 : i32
    %222 = vector.broadcast %c16_i32_100 : i32 to vector<4x8x8xi32>
    %223 = arith.shrui %221, %222 : vector<4x8x8xi32>
    %224 = arith.xori %221, %223 : vector<4x8x8xi32>
    %c8_i32_101 = arith.constant 8 : i32
    %225 = vector.broadcast %c8_i32_101 : i32 to vector<4x8x8xi32>
    %226 = arith.shrui %224, %225 : vector<4x8x8xi32>
    %227 = arith.sitofp %226 : vector<4x8x8xi32> to vector<4x8x8xf32>
    %cst_102 = arith.constant 5.96046448E-8 : f32
    %228 = vector.broadcast %cst_102 : f32 to vector<4x8x8xf32>
    %229 = arith.mulf %227, %228 : vector<4x8x8xf32>
    %230 = arith.addf %209, %229 : vector<4x8x8xf32>
    %c-1879881855_i32 = arith.constant -1879881855 : i32
    %231 = vector.broadcast %c-1879881855_i32 : i32 to vector<4x8x8xi32>
    %232 = arith.addi %63, %231 : vector<4x8x8xi32>
    %c16_i32_103 = arith.constant 16 : i32
    %233 = vector.broadcast %c16_i32_103 : i32 to vector<4x8x8xi32>
    %234 = arith.shrui %232, %233 : vector<4x8x8xi32>
    %235 = arith.xori %232, %234 : vector<4x8x8xi32>
    %c2146121005_i32_104 = arith.constant 2146121005 : i32
    %236 = vector.broadcast %c2146121005_i32_104 : i32 to vector<4x8x8xi32>
    %237 = arith.muli %235, %236 : vector<4x8x8xi32>
    %c15_i32_105 = arith.constant 15 : i32
    %238 = vector.broadcast %c15_i32_105 : i32 to vector<4x8x8xi32>
    %239 = arith.shrui %237, %238 : vector<4x8x8xi32>
    %240 = arith.xori %237, %239 : vector<4x8x8xi32>
    %c-2073254261_i32_106 = arith.constant -2073254261 : i32
    %241 = vector.broadcast %c-2073254261_i32_106 : i32 to vector<4x8x8xi32>
    %242 = arith.muli %240, %241 : vector<4x8x8xi32>
    %c16_i32_107 = arith.constant 16 : i32
    %243 = vector.broadcast %c16_i32_107 : i32 to vector<4x8x8xi32>
    %244 = arith.shrui %242, %243 : vector<4x8x8xi32>
    %245 = arith.xori %242, %244 : vector<4x8x8xi32>
    %c8_i32_108 = arith.constant 8 : i32
    %246 = vector.broadcast %c8_i32_108 : i32 to vector<4x8x8xi32>
    %247 = arith.shrui %245, %246 : vector<4x8x8xi32>
    %248 = arith.sitofp %247 : vector<4x8x8xi32> to vector<4x8x8xf32>
    %cst_109 = arith.constant 5.96046448E-8 : f32
    %249 = vector.broadcast %cst_109 : f32 to vector<4x8x8xf32>
    %250 = arith.mulf %248, %249 : vector<4x8x8xf32>
    %251 = arith.addf %230, %250 : vector<4x8x8xf32>
    %c774553914_i32 = arith.constant 774553914 : i32
    %252 = vector.broadcast %c774553914_i32 : i32 to vector<4x8x8xi32>
    %253 = arith.addi %63, %252 : vector<4x8x8xi32>
    %c16_i32_110 = arith.constant 16 : i32
    %254 = vector.broadcast %c16_i32_110 : i32 to vector<4x8x8xi32>
    %255 = arith.shrui %253, %254 : vector<4x8x8xi32>
    %256 = arith.xori %253, %255 : vector<4x8x8xi32>
    %c2146121005_i32_111 = arith.constant 2146121005 : i32
    %257 = vector.broadcast %c2146121005_i32_111 : i32 to vector<4x8x8xi32>
    %258 = arith.muli %256, %257 : vector<4x8x8xi32>
    %c15_i32_112 = arith.constant 15 : i32
    %259 = vector.broadcast %c15_i32_112 : i32 to vector<4x8x8xi32>
    %260 = arith.shrui %258, %259 : vector<4x8x8xi32>
    %261 = arith.xori %258, %260 : vector<4x8x8xi32>
    %c-2073254261_i32_113 = arith.constant -2073254261 : i32
    %262 = vector.broadcast %c-2073254261_i32_113 : i32 to vector<4x8x8xi32>
    %263 = arith.muli %261, %262 : vector<4x8x8xi32>
    %c16_i32_114 = arith.constant 16 : i32
    %264 = vector.broadcast %c16_i32_114 : i32 to vector<4x8x8xi32>
    %265 = arith.shrui %263, %264 : vector<4x8x8xi32>
    %266 = arith.xori %263, %265 : vector<4x8x8xi32>
    %c8_i32_115 = arith.constant 8 : i32
    %267 = vector.broadcast %c8_i32_115 : i32 to vector<4x8x8xi32>
    %268 = arith.shrui %266, %267 : vector<4x8x8xi32>
    %269 = arith.sitofp %268 : vector<4x8x8xi32> to vector<4x8x8xf32>
    %cst_116 = arith.constant 5.96046448E-8 : f32
    %270 = vector.broadcast %cst_116 : f32 to vector<4x8x8xf32>
    %271 = arith.mulf %269, %270 : vector<4x8x8xf32>
    %272 = arith.addf %251, %271 : vector<4x8x8xf32>
    %c-865977613_i32 = arith.constant -865977613 : i32
    %273 = vector.broadcast %c-865977613_i32 : i32 to vector<4x8x8xi32>
    %274 = arith.addi %63, %273 : vector<4x8x8xi32>
    %c16_i32_117 = arith.constant 16 : i32
    %275 = vector.broadcast %c16_i32_117 : i32 to vector<4x8x8xi32>
    %276 = arith.shrui %274, %275 : vector<4x8x8xi32>
    %277 = arith.xori %274, %276 : vector<4x8x8xi32>
    %c2146121005_i32_118 = arith.constant 2146121005 : i32
    %278 = vector.broadcast %c2146121005_i32_118 : i32 to vector<4x8x8xi32>
    %279 = arith.muli %277, %278 : vector<4x8x8xi32>
    %c15_i32_119 = arith.constant 15 : i32
    %280 = vector.broadcast %c15_i32_119 : i32 to vector<4x8x8xi32>
    %281 = arith.shrui %279, %280 : vector<4x8x8xi32>
    %282 = arith.xori %279, %281 : vector<4x8x8xi32>
    %c-2073254261_i32_120 = arith.constant -2073254261 : i32
    %283 = vector.broadcast %c-2073254261_i32_120 : i32 to vector<4x8x8xi32>
    %284 = arith.muli %282, %283 : vector<4x8x8xi32>
    %c16_i32_121 = arith.constant 16 : i32
    %285 = vector.broadcast %c16_i32_121 : i32 to vector<4x8x8xi32>
    %286 = arith.shrui %284, %285 : vector<4x8x8xi32>
    %287 = arith.xori %284, %286 : vector<4x8x8xi32>
    %c8_i32_122 = arith.constant 8 : i32
    %288 = vector.broadcast %c8_i32_122 : i32 to vector<4x8x8xi32>
    %289 = arith.shrui %287, %288 : vector<4x8x8xi32>
    %290 = arith.sitofp %289 : vector<4x8x8xi32> to vector<4x8x8xf32>
    %cst_123 = arith.constant 5.96046448E-8 : f32
    %291 = vector.broadcast %cst_123 : f32 to vector<4x8x8xf32>
    %292 = arith.mulf %290, %291 : vector<4x8x8xf32>
    %293 = arith.addf %272, %292 : vector<4x8x8xf32>
    %c1788458156_i32 = arith.constant 1788458156 : i32
    %294 = vector.broadcast %c1788458156_i32 : i32 to vector<4x8x8xi32>
    %295 = arith.addi %63, %294 : vector<4x8x8xi32>
    %c16_i32_124 = arith.constant 16 : i32
    %296 = vector.broadcast %c16_i32_124 : i32 to vector<4x8x8xi32>
    %297 = arith.shrui %295, %296 : vector<4x8x8xi32>
    %298 = arith.xori %295, %297 : vector<4x8x8xi32>
    %c2146121005_i32_125 = arith.constant 2146121005 : i32
    %299 = vector.broadcast %c2146121005_i32_125 : i32 to vector<4x8x8xi32>
    %300 = arith.muli %298, %299 : vector<4x8x8xi32>
    %c15_i32_126 = arith.constant 15 : i32
    %301 = vector.broadcast %c15_i32_126 : i32 to vector<4x8x8xi32>
    %302 = arith.shrui %300, %301 : vector<4x8x8xi32>
    %303 = arith.xori %300, %302 : vector<4x8x8xi32>
    %c-2073254261_i32_127 = arith.constant -2073254261 : i32
    %304 = vector.broadcast %c-2073254261_i32_127 : i32 to vector<4x8x8xi32>
    %305 = arith.muli %303, %304 : vector<4x8x8xi32>
    %c16_i32_128 = arith.constant 16 : i32
    %306 = vector.broadcast %c16_i32_128 : i32 to vector<4x8x8xi32>
    %307 = arith.shrui %305, %306 : vector<4x8x8xi32>
    %308 = arith.xori %305, %307 : vector<4x8x8xi32>
    %c8_i32_129 = arith.constant 8 : i32
    %309 = vector.broadcast %c8_i32_129 : i32 to vector<4x8x8xi32>
    %310 = arith.shrui %308, %309 : vector<4x8x8xi32>
    %311 = arith.sitofp %310 : vector<4x8x8xi32> to vector<4x8x8xf32>
    %cst_130 = arith.constant 5.96046448E-8 : f32
    %312 = vector.broadcast %cst_130 : f32 to vector<4x8x8xf32>
    %313 = arith.mulf %311, %312 : vector<4x8x8xf32>
    %314 = arith.addf %293, %313 : vector<4x8x8xf32>
    %cst_131 = arith.constant 6.000000e+00 : f32
    %315 = vector.broadcast %cst_131 : f32 to vector<4x8x8xf32>
    %316 = arith.subf %314, %315 : vector<4x8x8xf32>
    %317 = arith.mulf %316, %47 : vector<4x8x8xf32>
    %318 = arith.addf %40, %317 : vector<4x8x8xf32>
    %cst_132 = arith.constant 0.000000e+00 : f32
    %cst_133 = arith.constant 1.000000e+00 : f32
    %319 = vector.broadcast %cst_132 : f32 to vector<4x8x8xf32>
    %320 = arith.maximumf %319, %318 : vector<4x8x8xf32>
    %321 = vector.broadcast %cst_133 : f32 to vector<4x8x8xf32>
    %322 = arith.minimumf %321, %320 : vector<4x8x8xf32>
    %c0_134 = arith.constant 0 : index
    %c0_135 = arith.constant 0 : index
    %c0_136 = arith.constant 0 : index
    %323 = vector.load %arg5[%c0_134, %c0_135, %c0_136] : memref<4x8x8xf32, #tpu.memory_space<vmem>>, vector<4x8x8xf32>
    tpu.vector_store %arg5[%c0_134, %c0_135, %c0_136], %322 {strides = array<i32>} : memref<4x8x8xf32, #tpu.memory_space<vmem>>, vector<4x8x8xf32>,
    return
  }
  func.func @transform_0(%arg0: i32, %arg1: memref<1xi32, #tpu.memory_space<smem>>) -> (i32, i32) {
    %c0_i32 = arith.constant 0 : i32
    %c0_i32_0 = arith.constant 0 : i32
    %c0_i32_1 = arith.constant 0 : i32
    return %c0_i32, %c0_i32_0 : i32, i32
  }
  func.func @transform_1(%arg0: i32, %arg1: memref<1xi32, #tpu.memory_space<smem>>) -> (i32, i32) {
    %c0_i32 = arith.constant 0 : i32
    %c0_i32_0 = arith.constant 0 : i32
    %c0_i32_1 = arith.constant 0 : i32
    return %c0_i32, %c0_i32_0 : i32, i32
  }
  func.func @transform_2(%arg0: i32, %arg1: memref<1xi32, #tpu.memory_space<smem>>) -> (i32, i32, i32) {
    %c0_i32 = arith.constant 0 : i32
    %c0_i32_0 = arith.constant 0 : i32
    %c0_i32_1 = arith.constant 0 : i32
    return %arg0, %c0_i32, %c0_i32_0 : i32, i32, i32
  }
  func.func @transform_3(%arg0: i32, %arg1: memref<1xi32, #tpu.memory_space<smem>>) -> (i32, i32, i32) {
    %c0_i32 = arith.constant 0 : i32
    %c0_i32_0 = arith.constant 0 : i32
    %c0_i32_1 = arith.constant 0 : i32
    return %arg0, %c0_i32, %c0_i32_0 : i32, i32, i32
  }
}

</mosaic_0001>

<bundles_post_ra>
// kernel: tpu_custom_call.1
= control target key start
LH: loop header
LB: loop body
LE: loop exit
PB: predicated region body
PF: predicated region fallthrough
CT: control target
= control target key end

     0   :  { %s2148_s0 = inlined_call_operand.<no memory space> [shape: s32[1], index: 0, kind: input, shape index: {}]   ;;  %s2149_s1 = inlined_call_operand.vmem [shape: bf16[8,16], index: 1, kind: input, shape index: {}]   ;;  %s2150_s2 = inlined_call_operand.vmem [shape: bf16[16,8], index: 2, kind: input, shape index: {}]   ;;  %s2151_s3 = inlined_call_operand.hbm [shape: bf16[8,16,16], index: 3, kind: input, shape index: {}]   ;;  %s2152_s4 = inlined_call_operand.hbm [shape: f32[8,8,8], index: 4, kind: output, shape index: {}]  }
   0x1   :  { %9 = sst [smem:[#allocation3]] %s2148_s0 }
   0x2   :  { %10 = vsyncpa [#allocation5], 0 }
   0x3   :  { %12 = vsyncpa [#allocation5 + $0x1], 0 }
   0x4   :  { %13 = vsyncpa [#allocation6], 0 }
   0x5   :  { %15 = vsyncpa [#allocation6 + $0x1], 0  ;;  %s1741_s17 = smov 0   ;;  %s1743_s18 = smov 0  }
   0x6   :  { %s1745_s19 = smov 0   ;;  %s1747_s20 = smov 0  }
   0x7 LB: > { %s1762_s0 = sadd.s32 4294967295, %s1703_s20   ;;  %s1427_s21 = sadd.s32 4294967294, %s1703_s20   ;;  %s1703_s20 = sphi %s1747_s20, %s2165_s20   ;;  %s1699_s19 = sphi %s1745_s19, %s2164_s19   ;;  %s1695_s18 = sphi %s1743_s18, %s2163_s18   ;;  %s1691_s17 = sphi %s1741_s17, %s2162_s17  }
   0x8   : > { %s1766_s22 = sadd.s32 1, %s1703_s20   ;;  %s70_s23 = sadd.s32 1, %s1699_s19 }
   0x9   : > { %s67_s24 = ssub.s32 %s1703_s20, %s1766_s22  ;;  %p77_p0 = scmp.ne.s32.totalorder %s1699_s19, %s1695_s18 }
   0xa   : > { %p68_p1 = scmp.eq.s32.totalorder %s67_s24, 0  ;;  %p78_p2 = scmp.eq.s32.totalorder %s1703_s20, 0 }
   0xb   : > { %p83_p3 = scmp.ne.s32.totalorder %s1695_s18, %s1691_s17  ;;  %p84_p4 = scmp.eq.s32.totalorder %s1762_s0, 0 }
   0xc   : > { %s1778_s25 = scalar_select %p68_p1, %s1699_s19, %s70_s23  }
   0xd   : > { %p1780_p5 = por %p78_p2, %p77_p0  ;;  %p1784_p6 = por %p84_p4, %p83_p3 }
   0xe   : > { %p107_p7 = scmp.eq.s32.totalorder %s1762_s0, 1  ;;  %p113_p8 = scmp.eq.s32.totalorder %s1427_s21, 1 }
   0xf   : > { %p1551_p10 = scmp.lt.s32.totalorder %s1703_s20, 2  ;;  %s139_s30 = sand.u32 1, %s1699_s19  }
  0x10   : > { %p1791_p11 = por %p107_p7, %p77_p0  ;;  %p1795_p12 = por %p113_p8, %p83_p3 }
  0x11   : > { %s1473_s5 = sshll.u32 %s1703_s20, 9  ;;  %s1430_s6 = sshll.u32 %s139_s30, 5 }
  0x12   : > { %s2156_s28 = scalar_select %p1791_p11, 1, 0 }
  0x13   : > { %s2157_s29 = scalar_select %p1795_p12, 1, 0 }
  0x14   : > { %s1804_s9 = scalar_lea.hbm %s2151_s3, %s1473_s5  ;;  %s143_s10 = scalar_lea.vmem [#allocation4], %s1430_s6 }
  0x15   : > { %s151_s11 = sshll.u32 %s143_s10, 4  ;;  %p1808_p13 = pnand %p1551_p10, %p1780_p5  ;;  %s1812_s11 = int_to_ptr.vmem [resolvable:$true] %s151_s11 }
  0x16   : > { %s1814_s13 = scalar_lea.sflag [#allocation5], %s139_s30  ;;  %s1607_s14 = scalar_lea.hbm %s1804_s9, 512 }
  0x17   : > { %p1608_p0 = scmp.ne.s32.totalorder %s1804_s9, %s1607_s14  ;;  %p1609_p1 = pneg %p1808_p13 }
  0x18   : > { %s1612_s21 = scalar_lea.hbm %s2151_s3, 1024  ;;  %p1613_p4 = scmp.lt.u32.totalorder %s1804_s9, %s2151_s3 }
  0x19   : > { %p1610_p2 = pnand %p1609_p1, %p1608_p0  ;;  %p1614_p5 = scmp.lt.u32.totalorder %s1612_s21, %s1607_s14 }
  0x1a   : > { %p1616_p8 = scmp.lt.u32.totalorder %s1607_s14, %s1804_s9 }
  0x1b   : > { %p1611_p3 = pneg %p1610_p2  ;;  %p1615_p7 = por %p1614_p5, %p1613_p4 }
  0x1d   : > { %p1617_p10 = por %p1616_p8, %p1615_p7 }
  0x1f   : > { %p1618_p9 = pnand %p1617_p10, %p1611_p3 }
  0x21   : > { %1621 = shalt.err (!%p1618_p9)
}
  0x22   : > { %s1622_s26 = scalar_lea.vmem %s1812_s11, 512  ;;  %s1705_s30 = smov [#allocation4]  }
  0x23   : > { %p1623_p0 = scmp.ne.s32.totalorder %s1812_s11, %s1622_s26  ;;  %s1627_s5 = sshll.u32 %s1705_s30, 4  ;;  %s1628_s5 = int_to_ptr.vmem [resolvable:$false] %s1627_s5 }
  0x24   : > { %s1629_s6 = scalar_lea.vmem %s1628_s5, 1024  ;;  %p1630_p11 = scmp.lt.s32.totalorder %s1812_s11, %s1628_s5 }
  0x25   : > { %p1625_p2 = pnand %p1623_p0, %p1609_p1  ;;  %p1631_p4 = scmp.lt.s32.totalorder %s1629_s6, %s1622_s26 }
  0x27   : > { %p1626_p12 = pneg %p1625_p2  ;;  %p1632_p5 = por %p1631_p4, %p1630_p11 }
  0x29   : > { %p1633_p7 = pnand %p1632_p5, %p1626_p12 }
  0x2b   : > { %1636 = shalt.err (!%p1633_p7)
}
  0x2c   : > { %s1706_s7 = smov 64   ;;  %s1707_s8 = smov 4  }
  0x2d   : > { %1546 = dma.hbm_to_vmem [thread:$0]  (!%p1808_p13), %s1804_s9, 512, %s1812_s11, %s1814_s13, %s1706_s7, %s1706_s7, %s1707_s8  }
  0x2e   : > { %p1434_p9 = scmp.ge.s32.totalorder %s1703_s20, 1  ;;  %p159_p1 = scmp.lt.s32.totalorder %s1703_s20, 3 }
  0x30   : > { %p160_p3 = pnand %p1434_p9, %p159_p1 }
  0x31   : > { %s1845_s10 = sand.u32 (!%p160_p3), 1, %s1695_s18  }
  0x32   : > { %163 = sbr.rel (%p160_p3) target bundleno = 566 (0x236), region = 32  ;;  %s1435_s14 = sshll.u32 (!%p160_p3), %s1845_s10, 5 }
  0x33   : > { %s166_s15 = scalar_lea.sflag (!%p160_p3), [#allocation5], %s1845_s10  ;;  %s169_s16 = scalar_lea.vmem (!%p160_p3), [#allocation4], %s1435_s14 }
  0x39   : > { %1682 = dma.done.wait (%p1784_p6), %s166_s15, 512  }
  0x3a   : > { %1684 = vsyncadd (%p1784_p6), %s166_s15, 4294966784  ;;  %v1708_v0 = vmov 0.0   ;;  %vm1709_vm0 = vmmov 0   ;;  %v1591_v1 = vld [vmem:[%s169_s16] sm:$0xff]   ;;  %vm204_vm1 = vcmask 130048   ;;  %v1592_v3 = vld [vmem:[%s169_s16 + $0x8] sm:$0xff]   ;;  %v672_v33 = vlaneseq }
  0x3b   : > { %1491 = vmatprep.subr.bf16.mxu0 %v1708_v0  ;;  %1493 = vmatprep.mubr.msk.bf16.mxu0 %vm1709_vm0, %v1708_v0  ;;  %v195_v2 = vld [vmem:[%s2149_s1] sm:$0xf]  ;;  %v1593_v5 = vld [vmem:[%s169_s16 + $0x10] sm:$0xff]   ;;  %v1594_v7 = vld [vmem:[%s169_s16 + $0x18] sm:$0xff]   ;;  %s689_s9 = sld [smem:[#allocation3]]  ;;  %s1462_s11 = sshll.u32 %s1762_s0, 2 }
  0x3c   : > { %1497 = vmatprep.subr.bf16.mxu1 %v1708_v0  ;;  %1499 = vmatprep.mubr.msk.bf16.mxu1 %vm1709_vm0, %v1708_v0  ;;  %v302_v4 = vld [vmem:[%s2149_s1] sm:$0xf]  ;;  %v673_v34 = vshrl.u32 %v672_v33, 7  ;;  %v1896_v35 = vstv %s1462_s11  ;;  %v1901_v38 = vand.u32 127, %v672_v33  ;;  %vm300_vm2 = vcmask 64512   ;;  %s2028_s12 = scalar_lea.vmem [#allocation7], %s1435_s14 }
  0x3d   : > { %1492 = vmatpush3.bf16.msra.mxu0 %v1591_v1  ;;  %v409_v6 = vld [vmem:[%s2149_s1] sm:$0xf]  ;;  %v676_v36 = vmul.u32 64, %v1896_v35  ;;  %v669_v52 = vadd.s32 1, %v1896_v35  ;;  %s1474_s14 = sshll.u32 %s1762_s0, 9  ;;  %s1354_s13 = sshll.u32 %s2028_s12, 4  ;;  %s2102_s13 = int_to_ptr.vmem [resolvable:$true] %s1354_s13 }
  0x3e   : > { %1503 = vmatprep.subr.bf16.mxu0 %v1708_v0  ;;  %v516_v8 = vld [vmem:[%s2149_s1] sm:$0xf]  ;;  %v1899_v37 = vmul.u32 8, %v673_v34  ;;  %s2100_s24 = scalar_lea.hbm %s2152_s4, %s1474_s14  ;;  %s1341_s26 = scalar_lea.sflag [#allocation6], %s1845_s10 }
  0x3f   : > { %v1595_v9 = vld [vmem:[%s2150_s2] sm:$0xff]   ;;  %s1637_s30 = scalar_lea.vmem %s2102_s13, 512  ;;  %p2159_p11 = scmp.ne.s32.totalorder %s2156_s28, 0 }
  0x40   : > { %1494 = vmatmul.mubr.msk.bf16.vlgmr.msra.gmra.mrb[0].mxu0 %vm204_vm1, %v195_v2  ;;  %1498 = vmatpush3.bf16.msra.mxu1 %v1595_v9  ;;  %v1596_v11 = vld [vmem:[%s2150_s2] sm:$0xff]   ;;  %v681_v39 = vadd.s32 %v1899_v37, %v676_v36  ;;  %p1638_p6 = scmp.ne.s32.totalorder %s2102_s13, %s1637_s30  ;;  %s1710_s0 = smov [#allocation7]  }
  0x41   : > { %1504 = vmatpush3.bf16.msra.mxu0 %v1592_v3  ;;  %1505 = vmatprep.mubr.msk.bf16.mxu0 %vm1709_vm0, %v1708_v0  ;;  %v1597_v17 = vld [vmem:[%s2150_s2] sm:$0xff]   ;;  %s690_s27 = smul.u32 2654435769, %s689_s9  ;;  %s1641_s5 = sshll.u32 %s1710_s0, 4  ;;  %s1642_s5 = int_to_ptr.vmem [resolvable:$false] %s1641_s5 }
  0x42   : > { %1515 = vmatprep.subr.bf16.mxu0 %v1708_v0  ;;  %1509 = vmatprep.subr.bf16.mxu1 %v1708_v0  ;;  %v1598_v23 = vld [vmem:[%s2150_s2] sm:$0xff]   ;;  %v685_v40 = vadd.s32 %v681_v39, %v1901_v38  ;;  %p1639_p12 = pnand %p1638_p6, %p2159_p11  ;;  %s1643_s6 = scalar_lea.vmem %s1642_s5, 1024 }
  0x43   : > { %v1905_v41 = vstv %s690_s27  ;;  %p1644_p8 = scmp.lt.s32.totalorder %s2102_s13, %s1642_s5  ;;  %p1645_p10 = scmp.lt.s32.totalorder %s1643_s6, %s1637_s30 }
  0x44   : > { %v1908_v42 = vadd.s32 %v1905_v41, %v685_v40  ;;  %p1640_p13 = pneg %p1639_p12 }
  0x45   : > { %p1646_p0 = por %p1645_p10, %p1644_p8 }
  0x46   : > { %v696_v43 = vadd.s32 2654435769, %v1908_v42  ;;  %v744_v44 = vadd.s32 1013904242, %v1908_v42  ;;  %v796_v47 = vadd.s32 3668340011, %v1908_v42 }
  0x47   : > { %v848_v51 = vadd.s32 2027808484, %v1908_v42  ;;  %v900_v57 = vadd.s32 387276957, %v1908_v42  ;;  %v952_v63 = vadd.s32 3041712726, %v1908_v42  ;;  %p1647_p2 = pnand %p1646_p0, %p1640_p13 }
  0x48   : > { %1506 = vmatmul.mubr.msk.bf16.vlgmr.msra.gmra.mrb[4].mxu0 %vm204_vm1, %v302_v4  ;;  %v700_v45 = vshrl.u32 %v696_v43, 16  ;;  %v748_v46 = vshrl.u32 %v744_v44, 16  ;;  %v800_v50 = vshrl.u32 %v796_v47, 16 }
  0x49   : > { %1516 = vmatpush3.bf16.msra.mxu0 %v1593_v5  ;;  %1517 = vmatprep.mubr.msk.bf16.mxu0 %vm1709_vm0, %v1708_v0  ;;  %v852_v56 = vshrl.u32 %v848_v51, 16  ;;  %v904_v62 = vshrl.u32 %v900_v57, 16 }
  0x4a   : > { %1527 = vmatprep.subr.bf16.mxu0 %v1708_v0  ;;  %v704_v48 = vxor.u32 %v700_v45, %v696_v43  ;;  %v752_v49 = vxor.u32 %v748_v46, %v744_v44  ;;  %v804_v55 = vxor.u32 %v800_v50, %v796_v47 }
  0x4b   : > { %v856_v61 = vxor.u32 %v852_v56, %v848_v51  ;;  %v908_v5 = vxor.u32 %v904_v62, %v900_v57 }
  0x4c   : > { %v708_v53 = vmul.u32 2146121005, %v704_v48  ;;  %v756_v54 = vmul.u32 2146121005, %v752_v49 }
  0x4d   : > { %v808_v60 = vmul.u32 2146121005, %v804_v55  ;;  %v860_v4 = vmul.u32 2146121005, %v856_v61 }
  0x4e   : > { %v712_v58 = vshrl.u32 %v708_v53, 15  ;;  %v760_v59 = vshrl.u32 %v756_v54, 15 }
  0x4f   : > { %v812_v3 = vshrl.u32 %v808_v60, 15 }
  0x50   : > { %1518 = vmatmul.mubr.msk.bf16.vlgmr.msra.gmra.mrb[8].mxu0 %vm204_vm1, %v409_v6  ;;  %v716_v1 = vxor.u32 %v712_v58, %v708_v53  ;;  %v764_v2 = vxor.u32 %v760_v59, %v756_v54  ;;  %v956_v6 = vshrl.u32 %v952_v63, 16  ;;  %v1108_v58 = vadd.s32 2415085441, %v1908_v42 }
  0x51   : > { %1528 = vmatpush3.bf16.msra.mxu0 %v1594_v7  ;;  %1529 = vmatprep.mubr.msk.bf16.mxu0 %vm1709_vm0, %v1708_v0  ;;  %v1004_v7 = vadd.s32 1401181199, %v1908_v42 }
  0x52   : > { %v768_v9 = vmul.u32 2221713035, %v764_v2 }
  0x58   : > { %1530 = vmatmul.mubr.msk.bf16.vlgmr.msra.gmra.mrb[12].mxu0 %vm204_vm1, %v516_v8  ;;  %v720_v8 = vmul.u32 2221713035, %v716_v1 }
 0x113   : > { %v242_v10 = vpop.f32.mrb[0].mxu0 }
 0x114   : > { %v248_v12 = vpack.c.bf16 %v242_v10, %v242_v10  ;;  %v1495_v13 = vpop.f32.mrb[1].mxu0  ;;  %v816_v10 = vxor.u32 %v812_v3, %v808_v60 }
 0x115   : > { %v245_v14 = vpop.f32.mrb[2].mxu0 }
 0x116   : > { %v1496_v15 = vpop.f32.mrb[3].mxu0  ;;  %1500 = vmatmul.mubr.msk.bf16.vlgmr.msra.gmra.mrb[0].mxu1 %vm204_vm1, %v248_v12  ;;  %v1008_v12 = vshrl.u32 %v1004_v7, 16  ;;  %v912_v14 = vmul.u32 2146121005, %v908_v5  ;;  %v1160_v5 = vadd.s32 774553914, %v1908_v42 }
 0x117   : > { %1510 = vmatpush3.bf16.msra.mxu1 %v1596_v11  ;;  %1511 = vmatprep.mubr.msk.bf16.mxu1 %vm1709_vm0, %v1708_v0  ;;  %v864_v11 = vshrl.u32 %v860_v4, 15  ;;  %v960_v15 = vxor.u32 %v956_v6, %v952_v63 }
 0x118   : > { %1521 = vmatprep.subr.bf16.mxu1 %v1708_v0 }
 0x11b   : > { %v349_v16 = vpop.f32.mrb[4].mxu0 }
 0x11c   : > { %v355_v18 = vpack.c.bf16 %v349_v16, %v349_v16  ;;  %v1507_v19 = vpop.f32.mrb[5].mxu0  ;;  %v1056_v16 = vadd.s32 4055616968, %v1908_v42 }
 0x11d   : > { %v352_v20 = vpop.f32.mrb[6].mxu0  ;;  %v820_v19 = vmul.u32 2221713035, %v816_v10 }
 0x11e   : > { %v1508_v21 = vpop.f32.mrb[7].mxu0  ;;  %1512 = vmatmul.mubr.msk.bf16.vlgmr.msra.gmra.mrb[4].mxu1 %vm204_vm1, %v355_v18  ;;  %v772_v18 = vshrl.u32 %v768_v9, 16  ;;  %v1012_v20 = vxor.u32 %v1008_v12, %v1004_v7 }
 0x11f   : > { %1522 = vmatpush3.bf16.msra.mxu1 %v1597_v17  ;;  %1523 = vmatprep.mubr.msk.bf16.mxu1 %vm1709_vm0, %v1708_v0  ;;  %v724_v17 = vshrl.u32 %v720_v8, 16  ;;  %v868_v21 = vxor.u32 %v864_v11, %v860_v4  ;;  %v1112_v4 = vshrl.u32 %v1108_v58, 16 }
 0x120   : > { %1533 = vmatprep.subr.bf16.mxu1 %v1708_v0 }
 0x123   : > { %v456_v22 = vpop.f32.mrb[8].mxu0 }
 0x124   : > { %v462_v24 = vpack.c.bf16 %v456_v22, %v456_v22  ;;  %v1519_v25 = vpop.f32.mrb[9].mxu0 }
 0x125   : > { %v459_v26 = vpop.f32.mrb[10].mxu0  ;;  %v1060_v25 = vshrl.u32 %v1056_v16, 16 }
 0x126   : > { %v1520_v27 = vpop.f32.mrb[11].mxu0  ;;  %1524 = vmatmul.mubr.msk.bf16.vlgmr.msra.gmra.mrb[8].mxu1 %vm204_vm1, %v462_v24  ;;  %v964_v24 = vmul.u32 2146121005, %v960_v15  ;;  %v728_v26 = vxor.u32 %v724_v17, %v720_v8  ;;  %v1116_v17 = vxor.u32 %v1112_v4, %v1108_v58 }
 0x127   : > { %1534 = vmatpush3.bf16.msra.mxu1 %v1598_v23  ;;  %1535 = vmatprep.mubr.msk.bf16.mxu1 %vm1709_vm0, %v1708_v0  ;;  %v677_v0 = vmul.u32 64, %v669_v52  ;;  %v916_v23 = vshrl.u32 %v912_v14, 15  ;;  %v776_v27 = vxor.u32 %v772_v18, %v768_v9  ;;  %v1064_v34 = vxor.u32 %v1060_v25, %v1056_v16 }
 0x128   : > { %v968_v33 = vshrl.u32 %v964_v24, 15  ;;  %v732_v36 = vshrl.u32 %v728_v26, 8  ;;  %v1164_v18 = vshrl.u32 %v1160_v5, 16 }
 0x129   : > { %v682_v13 = vadd.s32 %v1899_v37, %v677_v0  ;;  %v780_v39 = vshrl.u32 %v776_v27, 8  ;;  %v1068_v48 = vmul.u32 2146121005, %v1064_v34  ;;  %v1120_v34 = vmul.u32 2146121005, %v1116_v17 }
 0x12a   : > { %v972_v47 = vxor.u32 %v968_v33, %v964_v24  ;;  %v736_v49 = vcvt.s32.f32 %v732_v36  ;;  %v1168_v36 = vxor.u32 %v1164_v18, %v1160_v5 }
 0x12b   : > { %v563_v28 = vpop.f32.mrb[12].mxu0  ;;  %v686_v22 = vadd.s32 %v682_v13, %v1901_v38  ;;  %v784_v50 = vcvt.s32.f32 %v780_v39  ;;  %v1072_v57 = vshrl.u32 %v1068_v48, 15 }
 0x12c   : > { %v569_v29 = vpack.c.bf16 %v563_v28, %v563_v28  ;;  %v1531_v30 = vpop.f32.mrb[13].mxu0  ;;  %v824_v28 = vshrl.u32 %v820_v19, 16  ;;  %v976_v56 = vmul.u32 2221713035, %v972_v47  ;;  %v740_v59 = vmul.f32 5.9604645e-08, %v736_v49 }
 0x12d   : > { %v566_v31 = vpop.f32.mrb[14].mxu0  ;;  %v872_v30 = vmul.u32 2221713035, %v868_v21  ;;  %v788_v60 = vmul.f32 5.9604645e-08, %v784_v50  ;;  %v1076_v3 = vxor.u32 %v1072_v57, %v1068_v48  ;;  %v1264_v57 = vadd.s32 1788458156, %v1908_v42 }
 0x12e   : > { %v1532_v32 = vpop.f32.mrb[15].mxu0  ;;  %1536 = vmatmul.mubr.msk.bf16.vlgmr.msra.gmra.mrb[12].mxu1 %vm204_vm1, %v569_v29  ;;  %v1016_v29 = vmul.u32 2146121005, %v1012_v20  ;;  %v1922_v31 = vadd.s32 %v1905_v41, %v686_v22  ;;  %v828_v40 = vxor.u32 %v824_v28, %v820_v19  ;;  %v980_v2 = vshrl.u32 %v976_v56, 16 }
 0x12f   : > { %v920_v32 = vxor.u32 %v916_v23, %v912_v14  ;;  %v876_v44 = vshrl.u32 %v872_v30, 16  ;;  %v792_v7 = vadd.f32 %v788_v60, %v740_v59  ;;  %v1080_v16 = vmul.u32 2221713035, %v1076_v3 }
 0x130   : > { %v1020_v43 = vshrl.u32 %v1016_v29, 15  ;;  %v697_v45 = vadd.s32 2654435769, %v1922_v31  ;;  %v832_v51 = vshrl.u32 %v828_v40, 8  ;;  %v745_v6 = vadd.s32 1013904242, %v1922_v31 }
 0x131   : > { %v924_v46 = vmul.u32 2221713035, %v920_v32  ;;  %v880_v53 = vxor.u32 %v876_v44, %v872_v30  ;;  %v797_v13 = vadd.s32 3668340011, %v1922_v31  ;;  %v984_v15 = vxor.u32 %v980_v2, %v976_v56 }
 0x132   : > { %v1024_v52 = vxor.u32 %v1020_v43, %v1016_v29  ;;  %v701_v54 = vshrl.u32 %v697_v45, 16  ;;  %v836_v61 = vcvt.s32.f32 %v832_v51  ;;  %v749_v12 = vshrl.u32 %v745_v6, 16 }
 0x133   : > { %v928_v55 = vshrl.u32 %v924_v46, 16  ;;  %v884_v63 = vshrl.u32 %v880_v53, 8  ;;  %v801_v20 = vshrl.u32 %v797_v13, 16  ;;  %v1212_v23 = vadd.s32 3428989683, %v1908_v42 }
 0x134   : > { %v1028_v62 = vmul.u32 2221713035, %v1024_v52  ;;  %v705_v0 = vxor.u32 %v701_v54, %v697_v45  ;;  %v840_v8 = vmul.f32 5.9604645e-08, %v836_v61  ;;  %v753_v19 = vxor.u32 %v749_v12, %v745_v6 }
 0x135   : > { %v932_v1 = vxor.u32 %v928_v55, %v924_v46  ;;  %v888_v10 = vcvt.s32.f32 %v884_v63  ;;  %v849_v24 = vadd.s32 2027808484, %v1922_v31  ;;  %v805_v28 = vxor.u32 %v801_v20, %v797_v13 }
 0x136   : > { %v1032_v9 = vshrl.u32 %v1028_v62, 16  ;;  %v709_v11 = vmul.u32 2146121005, %v705_v0  ;;  %v844_v21 = vadd.f32 %v840_v8, %v792_v7  ;;  %v757_v27 = vmul.u32 2146121005, %v753_v19 }
 0x137   : > { %v936_v14 = vshrl.u32 %v932_v1, 8  ;;  %v892_v25 = vmul.f32 5.9604645e-08, %v888_v10  ;;  %v988_v30 = vshrl.u32 %v984_v15, 8  ;;  %v1084_v32 = vshrl.u32 %v1080_v16, 16 }
 0x138   : > { %v1036_v22 = vxor.u32 %v1032_v9, %v1028_v62  ;;  %v713_v26 = vshrl.u32 %v709_v11, 15  ;;  %v853_v33 = vshrl.u32 %v849_v24, 16  ;;  %v761_v39 = vshrl.u32 %v757_v27, 15 }
 0x139   : > { %v940_v29 = vcvt.s32.f32 %v936_v14  ;;  %v809_v40 = vmul.u32 2146121005, %v805_v28  ;;  %v1216_v44 = vshrl.u32 %v1212_v23, 16  ;;  %v1932_v46 = vadd.s32 2, %v1896_v35 }
 0x13a   : > { %v1040_v43 = vshrl.u32 %v1036_v22, 8  ;;  %v857_v45 = vxor.u32 %v853_v33, %v849_v24  ;;  %v717_v47 = vxor.u32 %v713_v26, %v709_v11  ;;  %v765_v48 = vxor.u32 %v761_v39, %v757_v27 }
 0x13b   : > { %v813_v49 = vshrl.u32 %v809_v40, 15  ;;  %v896_v50 = vadd.f32 %v892_v25, %v844_v21  ;;  %v944_v51 = vmul.f32 5.9604645e-08, %v940_v29  ;;  %v992_v52 = vcvt.s32.f32 %v988_v30 }
 0x13c   : > { %v861_v53 = vmul.u32 2146121005, %v857_v45  ;;  %v1088_v54 = vxor.u32 %v1084_v32, %v1080_v16  ;;  %v1124_v55 = vshrl.u32 %v1120_v34, 15  ;;  %v1172_v56 = vmul.u32 2146121005, %v1168_v36 }
 0x13d   : > { %v1044_v58 = vcvt.s32.f32 %v1040_v43  ;;  %v1220_v59 = vxor.u32 %v1216_v44, %v1212_v23  ;;  %v678_v60 = vmul.u32 64, %v1932_v46  ;;  %v721_v61 = vmul.u32 2221713035, %v717_v47 }
 0x13e   : > { %v769_v62 = vmul.u32 2221713035, %v765_v48  ;;  %v817_v63 = vxor.u32 %v813_v49, %v809_v40  ;;  %v948_v0 = vadd.f32 %v944_v51, %v896_v50  ;;  %v996_v1 = vmul.f32 5.9604645e-08, %v992_v52 }
 0x13f   : > { %v865_v2 = vshrl.u32 %v861_v53, 15  ;;  %v901_v3 = vadd.s32 387276957, %v1922_v31  ;;  %v1092_v4 = vshrl.u32 %v1088_v54, 8  ;;  %v1128_v5 = vxor.u32 %v1124_v55, %v1120_v34 }
 0x140   : > { %v1176_v6 = vshrl.u32 %v1172_v56, 15  ;;  %v1268_v7 = vshrl.u32 %v1264_v57, 16  ;;  %v1048_v8 = vmul.f32 5.9604645e-08, %v1044_v58  ;;  %v1224_v9 = vmul.u32 2146121005, %v1220_v59 }
 0x141   : > { %v905_v10 = vshrl.u32 %v901_v3, 16  ;;  %v953_v42 = vadd.s32 3041712726, %v1922_v31  ;;  %v725_v11 = vshrl.u32 %v721_v61, 16  ;;  %v773_v12 = vshrl.u32 %v769_v62, 16 }
 0x142   : > { %v821_v13 = vmul.u32 2221713035, %v817_v63  ;;  %v1005_v14 = vadd.s32 1401181199, %v1922_v31  ;;  %v869_v15 = vxor.u32 %v865_v2, %v861_v53  ;;  %v1057_v18 = vadd.s32 4055616968, %v1922_v31 }
 0x143   : > { %v909_v16 = vxor.u32 %v905_v10, %v901_v3  ;;  %v957_v17 = vshrl.u32 %v953_v42, 16  ;;  %v1132_v19 = vmul.u32 2221713035, %v1128_v5  ;;  %v1180_v20 = vxor.u32 %v1176_v6, %v1172_v56 }
 0x144   : > { %v1272_v21 = vxor.u32 %v1268_v7, %v1264_v57  ;;  %v1009_v22 = vshrl.u32 %v1005_v14, 16  ;;  %v1228_v23 = vshrl.u32 %v1224_v9, 15  ;;  %v1061_v26 = vshrl.u32 %v1057_v18, 16 }
 0x145   : > { %v913_v24 = vmul.u32 2146121005, %v909_v16  ;;  %v961_v25 = vxor.u32 %v957_v17, %v953_v42  ;;  %v729_v27 = vxor.u32 %v725_v11, %v721_v61  ;;  %v777_v28 = vxor.u32 %v773_v12, %v769_v62 }
 0x146   : > { %v825_v29 = vshrl.u32 %v821_v13, 16  ;;  %v1013_v30 = vxor.u32 %v1009_v22, %v1005_v14  ;;  %v873_v32 = vmul.u32 2221713035, %v869_v15  ;;  %v1065_v36 = vxor.u32 %v1061_v26, %v1057_v18 }
 0x147   : > { %v917_v33 = vshrl.u32 %v913_v24, 15  ;;  %v965_v34 = vmul.u32 2146121005, %v961_v25  ;;  %v1000_v39 = vadd.f32 %v996_v1, %v948_v0  ;;  %v1276_v40 = vmul.u32 2146121005, %v1272_v21 }
 0x148   : > { %v1017_v43 = vmul.u32 2146121005, %v1013_v30  ;;  %v1109_v44 = vadd.s32 2415085441, %v1922_v31  ;;  %v1136_v45 = vshrl.u32 %v1132_v19, 16  ;;  %v1232_v50 = vxor.u32 %v1228_v23, %v1224_v9 }
 0x149   : > { %v1184_v47 = vmul.u32 2221713035, %v1180_v20  ;;  %v921_v48 = vxor.u32 %v917_v33, %v913_v24  ;;  %v969_v49 = vshrl.u32 %v965_v34, 15  ;;  %v1069_v52 = vmul.u32 2146121005, %v1065_v36 }
 0x14a   : > { %v1021_v51 = vshrl.u32 %v1017_v43, 15  ;;  %v1113_v53 = vshrl.u32 %v1109_v44, 16  ;;  %v733_v54 = vshrl.u32 %v729_v27, 8  ;;  %v781_v55 = vshrl.u32 %v777_v28, 8 }
 0x14b   : > { %v829_v56 = vxor.u32 %v825_v29, %v821_v13  ;;  %v877_v57 = vshrl.u32 %v873_v32, 16  ;;  %v1096_v58 = vcvt.s32.f32 %v1092_v4  ;;  %v1280_v59 = vshrl.u32 %v1276_v40, 15 }
 0x14c   : > { %v925_v61 = vmul.u32 2221713035, %v921_v48  ;;  %v1161_v62 = vadd.s32 774553914, %v1922_v31  ;;  %v1052_v63 = vadd.f32 %v1048_v8, %v1000_v39  ;;  %v1140_v0 = vxor.u32 %v1136_v45, %v1132_v19 }
 0x14d   : > { %v1188_v1 = vshrl.u32 %v1184_v47, 16  ;;  %v973_v2 = vxor.u32 %v969_v49, %v965_v34  ;;  %v1236_v3 = vmul.u32 2221713035, %v1232_v50  ;;  %v1025_v5 = vxor.u32 %v1021_v51, %v1017_v43 }
 0x14e   : > { %v1073_v6 = vshrl.u32 %v1069_v52, 15  ;;  %v1117_v7 = vxor.u32 %v1113_v53, %v1109_v44  ;;  %v737_v9 = vcvt.s32.f32 %v733_v54  ;;  %v785_v10 = vcvt.s32.f32 %v781_v55 }
 0x14f   : > { %v833_v42 = vshrl.u32 %v829_v56, 8  ;;  %v881_v11 = vxor.u32 %v877_v57, %v873_v32  ;;  %v1284_v12 = vxor.u32 %v1280_v59, %v1276_v40  ;;  %v929_v13 = vshrl.u32 %v925_v61, 16 }
 0x150   : > { %v1165_v14 = vshrl.u32 %v1161_v62, 16  ;;  %v1213_v4 = vadd.s32 3428989683, %v1922_v31  ;;  %v1100_v15 = vmul.f32 5.9604645e-08, %v1096_v58  ;;  %v1144_v16 = vshrl.u32 %v1140_v0, 8 }
 0x151   : > { %v1192_v17 = vxor.u32 %v1188_v1, %v1184_v47  ;;  %v977_v8 = vmul.u32 2221713035, %v973_v2  ;;  %v1240_v18 = vshrl.u32 %v1236_v3, 16  ;;  %v1029_v19 = vmul.u32 2221713035, %v1025_v5 }
 0x152   : > { %v1077_v20 = vxor.u32 %v1073_v6, %v1069_v52  ;;  %v1121_v21 = vmul.u32 2146121005, %v1117_v7  ;;  %v741_v22 = vmul.f32 5.9604645e-08, %v737_v9  ;;  %v789_v23 = vmul.f32 5.9604645e-08, %v785_v10 }
 0x153   : > { %v837_v24 = vcvt.s32.f32 %v833_v42  ;;  %v885_v25 = vshrl.u32 %v881_v11, 8  ;;  %v1288_v26 = vmul.u32 2221713035, %v1284_v12  ;;  %v933_v27 = vxor.u32 %v929_v13, %v925_v61 }
 0x154   : > { %v1169_v28 = vxor.u32 %v1165_v14, %v1161_v62  ;;  %v1217_v29 = vshrl.u32 %v1213_v4, 16  ;;  %v1104_v30 = vadd.f32 %v1100_v15, %v1052_v63  ;;  %v1148_v32 = vcvt.s32.f32 %v1144_v16 }
 0x155   : > { %v1196_v33 = vshrl.u32 %v1192_v17, 8  ;;  %v981_v34 = vshrl.u32 %v977_v8, 16  ;;  %v1033_v36 = vshrl.u32 %v1029_v19, 16  ;;  %v1081_v39 = vmul.u32 2221713035, %v1077_v20 }
 0x156   : > { %v1125_v40 = vshrl.u32 %v1121_v21, 15  ;;  %v1265_v43 = vadd.s32 1788458156, %v1922_v31  ;;  %v1944_v44 = vxor.u32 %v1240_v18, %v1236_v3  ;;  %v793_v45 = vadd.f32 %v789_v23, %v741_v22 }
 0x157   : > { %v841_v47 = vmul.f32 5.9604645e-08, %v837_v24  ;;  %v889_v48 = vcvt.s32.f32 %v885_v25  ;;  %v1292_v49 = vshrl.u32 %v1288_v26, 16  ;;  %v937_v50 = vshrl.u32 %v933_v27, 8 }
 0x158   : > { %v1173_v51 = vmul.u32 2146121005, %v1169_v28  ;;  %v1221_v52 = vxor.u32 %v1217_v29, %v1213_v4  ;;  %v1152_v53 = vmul.f32 5.9604645e-08, %v1148_v32  ;;  %v1200_v54 = vcvt.s32.f32 %v1196_v33 }
 0x159   : > { %v985_v55 = vxor.u32 %v981_v34, %v977_v8  ;;  %v683_v56 = vadd.s32 %v1899_v37, %v678_v60  ;;  %v1037_v57 = vxor.u32 %v1033_v36, %v1029_v19  ;;  %v1085_v58 = vshrl.u32 %v1081_v39, 16 }
 0x15a   : > { %v1949_v59 = vxor.u32 %v1125_v40, %v1121_v21  ;;  %v1269_v31 = vshrl.u32 %v1265_v43, 16  ;;  %v1248_v61 = vshrl.u32 %v1944_v44, 8  ;;  %v845_v62 = vadd.f32 %v841_v47, %v793_v45 }
 0x15b   : > { %v893_v63 = vmul.f32 5.9604645e-08, %v889_v48  ;;  %v687_v0 = vadd.s32 %v683_v56, %v1901_v38  ;;  %v1953_v1 = vxor.u32 %v1292_v49, %v1288_v26  ;;  %v941_v2 = vcvt.s32.f32 %v937_v50 }
 0x15c   : > { %v1177_v3 = vshrl.u32 %v1173_v51, 15  ;;  %v1225_v5 = vmul.u32 2146121005, %v1221_v52  ;;  %v1955_v6 = vadd.f32 %v1152_v53, %v1104_v30  ;;  %v1957_v46 = vmul.f32 5.9604645e-08, %v1200_v54 }
 0x15d   : > { %v989_v60 = vshrl.u32 %v985_v55, 8  ;;  %v1960_v7 = vadd.s32 %v1905_v41, %v687_v0  ;;  %v1041_v9 = vshrl.u32 %v1037_v57, 8  ;;  %v1089_v10 = vxor.u32 %v1085_v58, %v1081_v39 }
 0x15e   : > { %v1133_v42 = vmul.u32 2221713035, %v1949_v59  ;;  %v1273_v11 = vxor.u32 %v1269_v31, %v1265_v43  ;;  %v897_v12 = vadd.f32 %v893_v63, %v845_v62  ;;  %v945_v15 = vmul.f32 5.9604645e-08, %v941_v2 }
 0x15f   : > { %v698_v13 = vadd.s32 2654435769, %v1960_v7  ;;  %v746_v14 = vadd.s32 1013904242, %v1960_v7  ;;  %v798_v4 = vadd.s32 3668340011, %v1960_v7  ;;  %v1181_v16 = vxor.u32 %v1177_v3, %v1173_v51 }
 0x160   : > { %v1229_v17 = vshrl.u32 %v1225_v5, 15  ;;  %v850_v8 = vadd.s32 2027808484, %v1960_v7  ;;  %v993_v18 = vcvt.s32.f32 %v989_v60  ;;  %v1093_v22 = vshrl.u32 %v1089_v10, 8 }
 0x161   : > { %v702_v19 = vshrl.u32 %v698_v13, 16  ;;  %v750_v20 = vshrl.u32 %v746_v14, 16  ;;  %v802_v21 = vshrl.u32 %v798_v4, 16  ;;  %v1277_v23 = vmul.u32 2146121005, %v1273_v11 }
 0x162   : > { %v854_v24 = vshrl.u32 %v850_v8, 16  ;;  %v902_v25 = vadd.s32 387276957, %v1960_v7  ;;  %v1045_v26 = vcvt.s32.f32 %v1041_v9  ;;  %v1185_v30 = vmul.u32 2221713035, %v1181_v16 }
 0x163   : > { %v706_v27 = vxor.u32 %v702_v19, %v698_v13  ;;  %v754_v28 = vxor.u32 %v750_v20, %v746_v14  ;;  %v806_v29 = vxor.u32 %v802_v21, %v798_v4  ;;  %v954_v34 = vadd.s32 3041712726, %v1960_v7 }
 0x164   : > { %v858_v32 = vxor.u32 %v854_v24, %v850_v8  ;;  %v906_v33 = vshrl.u32 %v902_v25, 16  ;;  %v1137_v36 = vshrl.u32 %v1133_v42, 16  ;;  %v1233_v39 = vxor.u32 %v1229_v17, %v1225_v5 }
 0x165   : > { %v710_v40 = vmul.u32 2146121005, %v706_v27  ;;  %v758_v43 = vmul.u32 2146121005, %v754_v28  ;;  %v958_v49 = vshrl.u32 %v954_v34, 16  ;;  %v1281_v50 = vshrl.u32 %v1277_v23, 15 }
 0x166   : > { %v810_v45 = vmul.u32 2146121005, %v806_v29  ;;  %v862_v47 = vmul.u32 2146121005, %v858_v32  ;;  %v910_v48 = vxor.u32 %v906_v33, %v902_v25  ;;  %v1006_v53 = vadd.s32 1401181199, %v1960_v7 }
 0x167   : > { %v714_v51 = vshrl.u32 %v710_v40, 15  ;;  %v762_v52 = vshrl.u32 %v758_v43, 15  ;;  %v949_v54 = vadd.f32 %v945_v15, %v897_v12  ;;  %v962_v57 = vxor.u32 %v958_v49, %v954_v34 }
 0x168   : > { %v814_v55 = vshrl.u32 %v810_v45, 15  ;;  %v866_v56 = vshrl.u32 %v862_v47, 15  ;;  %v997_v58 = vmul.f32 5.9604645e-08, %v993_v18  ;;  %v914_v62 = vmul.u32 2146121005, %v910_v48 }
 0x169   : > { %v718_v59 = vxor.u32 %v714_v51, %v710_v40  ;;  %v766_v31 = vxor.u32 %v762_v52, %v758_v43  ;;  %v1141_v63 = vxor.u32 %v1137_v36, %v1133_v42  ;;  %v1189_v0 = vshrl.u32 %v1185_v30, 16 }
 0x16a   : > { %v1237_v2 = vmul.u32 2221713035, %v1233_v39  ;;  %v1010_v3 = vshrl.u32 %v1006_v53, 16  ;;  %v1300_v5 = vshrl.u32 %v1953_v1, 8  ;;  %v1097_v60 = vcvt.s32.f32 %v1093_v22 }
 0x16b   : > { %v1285_v9 = vxor.u32 %v1281_v50, %v1277_v23  ;;  %v818_v10 = vxor.u32 %v814_v55, %v810_v45  ;;  %v1049_v11 = vmul.f32 5.9604645e-08, %v1045_v26  ;;  %v870_v13 = vxor.u32 %v866_v56, %v862_v47 }
 0x16c   : > { %v966_v14 = vmul.u32 2146121005, %v962_v57  ;;  %v671_v12 = vadd.s32 3, %v1896_v35  ;;  %v1001_v4 = vadd.f32 %v997_v58, %v949_v54  ;;  %v722_v15 = vmul.u32 2221713035, %v718_v59 }
 0x16d   : > { %v770_v16 = vmul.u32 2221713035, %v766_v31  ;;  %v918_v17 = vshrl.u32 %v914_v62, 15  ;;  %v1145_v8 = vshrl.u32 %v1141_v63, 8  ;;  %v1193_v18 = vxor.u32 %v1189_v0, %v1185_v30 }
 0x16e   : > { %v1241_v42 = vshrl.u32 %v1237_v2, 16  ;;  %v1014_v19 = vxor.u32 %v1010_v3, %v1006_v53  ;;  %v1252_v20 = vcvt.s32.f32 %v1248_v61  ;;  %v1289_v1 = vmul.u32 2221713035, %v1285_v9 }
 0x16f   : > { %v822_v21 = vmul.u32 2221713035, %v818_v10  ;;  %v1058_v22 = vadd.s32 4055616968, %v1960_v7  ;;  %v1208_v23 = vadd.f32 %v1957_v46, %v1955_v6  ;;  %v874_v24 = vmul.u32 2221713035, %v870_v13 }
 0x170   : > { %v970_v35 = vshrl.u32 %v966_v14, 15  ;;  %v679_v25 = vmul.u32 64, %v671_v12  ;;  %v1101_v26 = vmul.f32 5.9604645e-08, %v1097_v60  ;;  %v726_v27 = vshrl.u32 %v722_v15, 16 }
 0x171   : > { %v774_v28 = vshrl.u32 %v770_v16, 16  ;;  %v922_v29 = vxor.u32 %v918_v17, %v914_v62  ;;  %v1053_v30 = vadd.f32 %v1049_v11, %v1001_v4  ;;  %v1149_v32 = vcvt.s32.f32 %v1145_v8 }
 0x172   : > { %v1197_v33 = vshrl.u32 %v1193_v18, 8  ;;  %v1018_v34 = vmul.u32 2146121005, %v1014_v19  ;;  %v1256_v44 = vmul.f32 5.9604645e-08, %v1252_v20  ;;  %v1245_v61 = vxor.u32 %v1241_v42, %v1237_v2 }
 0x173   : > { %v826_v36 = vshrl.u32 %v822_v21, 16  ;;  %v1062_v39 = vshrl.u32 %v1058_v22, 16  ;;  %v1293_v40 = vshrl.u32 %v1289_v1, 16  ;;  %v878_v43 = vshrl.u32 %v874_v24, 16 }
 0x174   : > { %v974_v45 = vxor.u32 %v970_v35, %v966_v14  ;;  %v684_v6 = vadd.s32 %v1899_v37, %v679_v25  ;;  %v1304_v46 = vcvt.s32.f32 %v1300_v5  ;;  %v730_v47 = vxor.u32 %v726_v27, %v722_v15 }
 0x175   : > { %v778_v48 = vxor.u32 %v774_v28, %v770_v16  ;;  %v926_v49 = vmul.u32 2221713035, %v922_v29  ;;  %v1105_v50 = vadd.f32 %v1101_v26, %v1053_v30  ;;  %v1153_v51 = vmul.f32 5.9604645e-08, %v1149_v32 }
 0x176   : > { %v1201_v52 = vcvt.s32.f32 %v1197_v33  ;;  %v1022_v53 = vshrl.u32 %v1018_v34, 15  ;;  %v1260_v54 = vadd.f32 %v1256_v44, %v1208_v23  ;;  %v1249_v55 = vshrl.u32 %v1245_v61, 8 }
 0x177   : > { %v830_v56 = vxor.u32 %v826_v36, %v822_v21  ;;  %v1066_v57 = vxor.u32 %v1062_v39, %v1058_v22  ;;  %v1297_v58 = vxor.u32 %v1293_v40, %v1289_v1  ;;  %v882_v59 = vxor.u32 %v878_v43, %v874_v24 }
 0x178   : > { %v978_v31 = vmul.u32 2221713035, %v974_v45  ;;  %v688_v62 = vadd.s32 %v684_v6, %v1901_v38  ;;  %v1308_v63 = vmul.f32 5.9604645e-08, %v1304_v46  ;;  %v734_v0 = vshrl.u32 %v730_v47, 8 }
 0x179   : > { %v782_v37 = vshrl.u32 %v778_v48, 8  ;;  %v930_v2 = vshrl.u32 %v926_v49, 16  ;;  %v1157_v3 = vadd.f32 %v1153_v51, %v1105_v50  ;;  %v1205_v5 = vmul.f32 5.9604645e-08, %v1201_v52 }
 0x17a   : > { %v1026_v60 = vxor.u32 %v1022_v53, %v1018_v34  ;;  %v1253_v9 = vcvt.s32.f32 %v1249_v55  ;;  %v834_v10 = vshrl.u32 %v830_v56, 8  ;;  %v1070_v11 = vmul.u32 2146121005, %v1066_v57 }
 0x17b   : > { %v1301_v13 = vshrl.u32 %v1297_v58, 8  ;;  %v886_v14 = vshrl.u32 %v882_v59, 8  ;;  %v982_v12 = vshrl.u32 %v978_v31, 16  ;;  %v1980_v4 = vadd.s32 %v1905_v41, %v688_v62 }
 0x17c   : > { %v1982_v15 = vadd.f32 %v1308_v63, %v1260_v54  ;;  %v738_v16 = vcvt.s32.f32 %v734_v0  ;;  %v786_v38 = vcvt.s32.f32 %v782_v37  ;;  %v934_v17 = vxor.u32 %v930_v2, %v926_v49 }
 0x17d   : > { %v1984_v8 = vadd.f32 %v1205_v5, %v1157_v3  ;;  %v1030_v18 = vmul.u32 2221713035, %v1026_v60  ;;  %v1110_v42 = vadd.s32 2415085441, %v1960_v7  ;;  %v699_v19 = vadd.s32 2654435769, %v1980_v4 }
 0x17e   : > { %v1988_v20 = vmul.f32 5.9604645e-08, %v1253_v9  ;;  %v838_v1 = vcvt.s32.f32 %v834_v10  ;;  %v1074_v21 = vshrl.u32 %v1070_v11, 15  ;;  %v747_v22 = vadd.s32 1013904242, %v1980_v4 }
 0x17f   : > { %v1991_v41 = vcvt.s32.f32 %v1301_v13  ;;  %v890_v23 = vcvt.s32.f32 %v886_v14  ;;  %v986_v24 = vxor.u32 %v982_v12, %v978_v31  ;;  %v703_v35 = vshrl.u32 %v699_v19, 16 }
 0x180   : > { %v742_v25 = vmul.f32 5.9604645e-08, %v738_v16  ;;  %v790_v26 = vmul.f32 5.9604645e-08, %v786_v38  ;;  %v938_v27 = vshrl.u32 %v934_v17, 8  ;;  %v751_v28 = vshrl.u32 %v747_v22, 16 }
 0x181   : > { %v1034_v29 = vshrl.u32 %v1030_v18, 16  ;;  %v1114_v30 = vshrl.u32 %v1110_v42, 16  ;;  %v1162_v32 = vadd.s32 774553914, %v1960_v7  ;;  %v707_v33 = vxor.u32 %v703_v35, %v699_v19 }
 0x182   : > { %v842_v34 = vmul.f32 5.9604645e-08, %v838_v1  ;;  %v1078_v44 = vxor.u32 %v1074_v21, %v1070_v11  ;;  %v755_v61 = vxor.u32 %v751_v28, %v747_v22  ;;  %v799_v36 = vadd.s32 3668340011, %v1980_v4 }
 0x183   : > { %v894_v39 = vmul.f32 5.9604645e-08, %v890_v23  ;;  %v990_v40 = vshrl.u32 %v986_v24, 8  ;;  %v1214_v43 = vadd.s32 3428989683, %v1960_v7  ;;  %v851_v45 = vadd.s32 2027808484, %v1980_v4 }
 0x184   : > { %v942_v6 = vcvt.s32.f32 %v938_v27  ;;  %v711_v46 = vmul.u32 2146121005, %v707_v33  ;;  %v759_v47 = vmul.u32 2146121005, %v755_v61  ;;  %v803_v48 = vshrl.u32 %v799_v36, 16 }
 0x185   : > { %v794_v49 = vadd.f32 %v790_v26, %v742_v25  ;;  %v1118_v50 = vxor.u32 %v1114_v30, %v1110_v42  ;;  %v1166_v51 = vshrl.u32 %v1162_v32, 16  ;;  %v855_v52 = vshrl.u32 %v851_v45, 16 }
 0x186   : > { %v1038_v53 = vxor.u32 %v1034_v29, %v1030_v18  ;;  %v715_v54 = vshrl.u32 %v711_v46, 15  ;;  %v763_v55 = vshrl.u32 %v759_v47, 15  ;;  %v807_v56 = vxor.u32 %v803_v48, %v799_v36 }
 0x187   : > { %v994_v57 = vcvt.s32.f32 %v990_v40  ;;  %v1082_v58 = vmul.u32 2221713035, %v1078_v44  ;;  %v1218_v59 = vshrl.u32 %v1214_v43, 16  ;;  %v859_v31 = vxor.u32 %v855_v52, %v851_v45 }
 0x188   : > { %v1266_v62 = vadd.s32 1788458156, %v1960_v7  ;;  %v719_v63 = vxor.u32 %v715_v54, %v711_v46  ;;  %v767_v0 = vxor.u32 %v763_v55, %v759_v47  ;;  %v811_v37 = vmul.u32 2146121005, %v807_v56 }
 0x189   : > { %v846_v2 = vadd.f32 %v842_v34, %v794_v49  ;;  %v1122_v3 = vmul.u32 2146121005, %v1118_v50  ;;  %v1170_v5 = vxor.u32 %v1166_v51, %v1162_v32  ;;  %v863_v60 = vmul.u32 2146121005, %v859_v31 }
 0x18a   : > { %v946_v9 = vmul.f32 5.9604645e-08, %v942_v6  ;;  %v723_v10 = vmul.u32 2221713035, %v719_v63  ;;  %v771_v11 = vmul.u32 2221713035, %v767_v0  ;;  %v815_v13 = vshrl.u32 %v811_v37, 15 }
 0x18b   : > { %v1042_v14 = vshrl.u32 %v1038_v53, 8  ;;  %v1086_v12 = vshrl.u32 %v1082_v58, 16  ;;  %v1998_v16 = vxor.u32 %v1218_v59, %v1214_v43  ;;  %v867_v38 = vshrl.u32 %v863_v60, 15 }
 0x18c   : > { %v1270_v17 = vshrl.u32 %v1266_v62, 16  ;;  %v727_v18 = vshrl.u32 %v723_v10, 16  ;;  %v775_v42 = vshrl.u32 %v771_v11, 16  ;;  %v819_v7 = vxor.u32 %v815_v13, %v811_v37 }
 0x18d   : > { %v898_v19 = vadd.f32 %v894_v39, %v846_v2  ;;  %v2000_v1 = vmul.f32 5.9604645e-08, %v994_v57  ;;  %v1174_v21 = vmul.u32 2146121005, %v1170_v5  ;;  %v871_v22 = vxor.u32 %v867_v38, %v863_v60 }
 0x18e   : > { %v1126_v23 = vshrl.u32 %v1122_v3, 15  ;;  %v731_v24 = vxor.u32 %v727_v18, %v723_v10  ;;  %v779_v35 = vxor.u32 %v775_v42, %v771_v11  ;;  %v823_v25 = vmul.u32 2221713035, %v819_v7 }
 0x18f   : > { %v1046_v26 = vcvt.s32.f32 %v1042_v14  ;;  %v2002_v27 = vxor.u32 %v1086_v12, %v1082_v58  ;;  %v875_v28 = vmul.u32 2221713035, %v871_v22  ;;  %v903_v29 = vadd.s32 387276957, %v1980_v4 }
 0x190   : > { %v1226_v30 = vmul.u32 2146121005, %v1998_v16  ;;  %v2006_v32 = vxor.u32 %v1270_v17, %v1266_v62  ;;  %v735_v33 = vshrl.u32 %v731_v24, 8  ;;  %v827_v34 = vshrl.u32 %v823_v25, 16 }
 0x191   : > { %v783_v44 = vshrl.u32 %v779_v35, 8  ;;  %v907_v61 = vshrl.u32 %v903_v29, 16  ;;  %v955_v36 = vadd.s32 3041712726, %v1980_v4  ;;  %v1007_v39 = vadd.s32 1401181199, %v1980_v4 }
 0x192   : > { %v2010_v40 = vadd.f32 %v946_v9, %v898_v19  ;;  %v2012_v43 = vxor.u32 %v1126_v23, %v1122_v3  ;;  %v1178_v45 = vshrl.u32 %v1174_v21, 15  ;;  %v879_v6 = vshrl.u32 %v875_v28, 16 }
 0x193   : > { %v739_v46 = vcvt.s32.f32 %v735_v33  ;;  %v911_v47 = vxor.u32 %v907_v61, %v903_v29  ;;  %v959_v48 = vshrl.u32 %v955_v36, 16  ;;  %v1011_v49 = vshrl.u32 %v1007_v39, 16 }
 0x194   : > { %v2014_v50 = vmul.f32 5.9604645e-08, %v1046_v26  ;;  %v1230_v51 = vshrl.u32 %v1226_v30, 15  ;;  %v1278_v52 = vmul.u32 2146121005, %v2006_v32  ;;  %v831_v53 = vxor.u32 %v827_v34, %v823_v25 }
 0x195   : > { %v787_v54 = vcvt.s32.f32 %v783_v44  ;;  %v915_v55 = vmul.u32 2146121005, %v911_v47  ;;  %v963_v56 = vxor.u32 %v959_v48, %v955_v36  ;;  %v1015_v57 = vxor.u32 %v1011_v49, %v1007_v39 }
 0x196   : > { %v1134_v58 = vmul.u32 2221713035, %v2012_v43  ;;  %v2018_v59 = vxor.u32 %v1178_v45, %v1174_v21  ;;  %v883_v31 = vxor.u32 %v879_v6, %v875_v28  ;;  %v1059_v62 = vadd.s32 4055616968, %v1980_v4 }
 0x197   : > { %v743_v63 = vmul.f32 5.9604645e-08, %v739_v46  ;;  %v919_v0 = vshrl.u32 %v915_v55, 15  ;;  %v967_v37 = vmul.u32 2146121005, %v963_v56  ;;  %v1019_v2 = vmul.u32 2146121005, %v1015_v57 }
 0x198   : > { %v835_v3 = vshrl.u32 %v831_v53, 8  ;;  %v1063_v5 = vshrl.u32 %v1059_v62, 16  ;;  %v1111_v60 = vadd.s32 2415085441, %v1980_v4  ;;  %v1163_v9 = vadd.s32 774553914, %v1980_v4 }
 0x199   : > { %v791_v10 = vmul.f32 5.9604645e-08, %v787_v54  ;;  %v923_v11 = vxor.u32 %v919_v0, %v915_v55  ;;  %v971_v13 = vshrl.u32 %v967_v37, 15  ;;  %v1023_v14 = vshrl.u32 %v1019_v2, 15 }
 0x19a   : > { %v887_v12 = vshrl.u32 %v883_v31, 8  ;;  %v1067_v16 = vxor.u32 %v1063_v5, %v1059_v62  ;;  %v1115_v38 = vshrl.u32 %v1111_v60, 16  ;;  %v1167_v17 = vshrl.u32 %v1163_v9, 16 }
 0x19b   : > { %v927_v18 = vmul.u32 2221713035, %v923_v11  ;;  %v975_v42 = vxor.u32 %v971_v13, %v967_v37  ;;  %v1027_v7 = vxor.u32 %v1023_v14, %v1019_v2  ;;  %v1215_v19 = vadd.s32 3428989683, %v1980_v4 }
 0x19c   : > { %v839_v21 = vcvt.s32.f32 %v835_v3  ;;  %v1071_v22 = vmul.u32 2146121005, %v1067_v16  ;;  %v1119_v23 = vxor.u32 %v1115_v38, %v1111_v60  ;;  %v1171_v24 = vxor.u32 %v1167_v17, %v1163_v9 }
 0x19d   : > { %v931_v35 = vshrl.u32 %v927_v18, 16  ;;  %v979_v25 = vmul.u32 2221713035, %v975_v42  ;;  %v1031_v26 = vmul.u32 2221713035, %v1027_v7  ;;  %v1219_v28 = vshrl.u32 %v1215_v19, 16 }
 0x19e   : > { %v2024_v33 = vxor.u32 %v1230_v51, %v1226_v30  ;;  %v1075_v34 = vshrl.u32 %v1071_v22, 15  ;;  %v1123_v44 = vmul.u32 2146121005, %v1119_v23  ;;  %v1175_v61 = vmul.u32 2146121005, %v1171_v24 }
 0x19f   : > { %v1186_v39 = vmul.u32 2221713035, %v2018_v59  ;;  %v1282_v45 = vshrl.u32 %v1278_v52, 15  ;;  %v935_v6 = vxor.u32 %v931_v35, %v927_v18  ;;  %v983_v46 = vshrl.u32 %v979_v25, 16 }
 0x1a0   : > { %v1079_v30 = vxor.u32 %v1075_v34, %v1071_v22  ;;  %v1127_v48 = vshrl.u32 %v1123_v44, 15  ;;  %v1223_v49 = vxor.u32 %v1219_v28, %v1215_v19  ;;  %v1267_v51 = vadd.s32 1788458156, %v1980_v4 }
 0x1a1   : > { %v1138_v54 = vshrl.u32 %v1134_v58, 16  ;;  %v795_v55 = vadd.f32 %v791_v10, %v743_v63  ;;  %v843_v56 = vmul.f32 5.9604645e-08, %v839_v21  ;;  %v891_v57 = vcvt.s32.f32 %v887_v12 }
 0x1a2   : > { %v939_v31 = vshrl.u32 %v935_v6, 8  ;;  %v1035_v59 = vshrl.u32 %v1031_v26, 16  ;;  %v1179_v62 = vshrl.u32 %v1175_v61, 15  ;;  %v1271_v0 = vshrl.u32 %v1267_v51, 16 }
 0x1a3   : > { %v1094_v37 = vshrl.u32 %v2002_v27, 8  ;;  %v987_v2 = vxor.u32 %v983_v46, %v979_v25  ;;  %v1083_v3 = vmul.u32 2221713035, %v1079_v30  ;;  %v1131_v5 = vxor.u32 %v1127_v48, %v1123_v44 }
 0x1a4   : > { %v1002_v4 = vadd.f32 %v2000_v1, %v2010_v40  ;;  %v1238_v60 = vmul.u32 2221713035, %v2024_v33  ;;  %v1227_v9 = vmul.u32 2146121005, %v1223_v49  ;;  %v1275_v63 = vxor.u32 %v1271_v0, %v1267_v51 }
 0x1a5   : > { %v1142_v10 = vxor.u32 %v1138_v54, %v1134_v58  ;;  %v1190_v11 = vshrl.u32 %v1186_v39, 16  ;;  %v1286_v13 = vxor.u32 %v1282_v45, %v1278_v52  ;;  %v895_v14 = vmul.f32 5.9604645e-08, %v891_v57 }
 0x1a6   : > { %v847_v16 = vadd.f32 %v843_v56, %v795_v55  ;;  %v943_v38 = vcvt.s32.f32 %v939_v31  ;;  %v1039_v17 = vxor.u32 %v1035_v59, %v1031_v26  ;;  %v1183_v18 = vxor.u32 %v1179_v62, %v1175_v61 }
 0x1a7   : > { %v991_v42 = vshrl.u32 %v987_v2, 8  ;;  %v1087_v43 = vshrl.u32 %v1083_v3, 16  ;;  %v1135_v58 = vmul.u32 2221713035, %v1131_v5  ;;  %v1098_v19 = vcvt.s32.f32 %v1094_v37 }
 0x1a8   : > { %v1242_v32 = vshrl.u32 %v1238_v60, 16  ;;  %v1231_v52 = vshrl.u32 %v1227_v9, 15  ;;  %v1279_v21 = vmul.u32 2146121005, %v1275_v63  ;;  %v1146_v24 = vshrl.u32 %v1142_v10, 8 }
 0x1a9   : > { %v1194_v35 = vxor.u32 %v1190_v11, %v1186_v39  ;;  %v1290_v25 = vmul.u32 2221713035, %v1286_v13  ;;  %v899_v26 = vadd.f32 %v895_v14, %v847_v16  ;;  %v947_v28 = vmul.f32 5.9604645e-08, %v943_v38 }
 0x1aa   : > { %v1187_v33 = vmul.u32 2221713035, %v1183_v18  ;;  %v995_v44 = vcvt.s32.f32 %v991_v42  ;;  %v1091_v61 = vxor.u32 %v1087_v43, %v1083_v3  ;;  %v1054_v45 = vadd.f32 %v2014_v50, %v1002_v4 }
 0x1ab   : > { %v1246_v6 = vxor.u32 %v1242_v32, %v1238_v60  ;;  %v1235_v46 = vxor.u32 %v1231_v52, %v1227_v9  ;;  %v1102_v39 = vmul.f32 5.9604645e-08, %v1098_v19  ;;  %v1198_v30 = vshrl.u32 %v1194_v35, 8 }
 0x1ac   : > { %v1294_v48 = vshrl.u32 %v1290_v25, 16  ;;  %v951_v54 = vadd.f32 %v947_v28, %v899_v26  ;;  %v1191_v56 = vshrl.u32 %v1187_v33, 16  ;;  %v999_v31 = vmul.f32 5.9604645e-08, %v995_v44 }
 0x1ad   : > { %v1095_v59 = vshrl.u32 %v1091_v61, 8  ;;  %v1261_v0 = vadd.f32 %v1988_v20, %v1984_v8  ;;  %v1250_v37 = vshrl.u32 %v1246_v6, 8  ;;  %v1239_v3 = vmul.u32 2221713035, %v1235_v46 }
 0x1ae   : > { %v1309_v60 = vmul.f32 5.9604645e-08, %v1991_v41  ;;  %v1106_v9 = vadd.f32 %v1102_v39, %v1054_v45  ;;  %v1298_v63 = vxor.u32 %v1294_v48, %v1290_v25  ;;  %v1202_v13 = vcvt.s32.f32 %v1198_v30 }
 0x1af   : > { %v1003_v38 = vadd.f32 %v999_v31, %v951_v54  ;;  %v1254_v20 = vcvt.s32.f32 %v1250_v37  ;;  %v1243_v18 = vshrl.u32 %v1239_v3, 16 }
 0x1b0   : > { %v1302_v41 = vshrl.u32 %v1298_v63, 8  ;;  %v1313_v42 = vadd.f32 %v1309_v60, %v1261_v0 }
 0x1b1   : > { %v1258_v25 = vmul.f32 5.9604645e-08, %v1254_v20  ;;  %v1247_v26 = vxor.u32 %v1243_v18, %v1239_v3 }
 0x1b2   : > { %v1306_v61 = vcvt.s32.f32 %v1302_v41 }
 0x1e9   : > { %v294_v29 = vpop.f32.mrb[0].mxu1 }
 0x1ea   : > { %301 = vst.msk [vmem:[%s2028_s12] sm:$0xff] %vm300_vm2, %v294_v29  ;;  %v1501_v36 = vpop.f32.mrb[1].mxu1  ;;  %v1043_v29 = vshrl.u32 %v1039_v17, 8  ;;  %v1099_v17 = vcvt.s32.f32 %v1095_v59 }
 0x1eb   : > { %v297_v47 = vpop.f32.mrb[2].mxu1  ;;  %v1139_v36 = vshrl.u32 %v1135_v58, 16 }
 0x1ec   : > { %v1502_v53 = vpop.f32.mrb[3].mxu1  ;;  %v1283_v47 = vshrl.u32 %v1279_v21, 15  ;;  %v1047_v55 = vcvt.s32.f32 %v1043_v29 }
 0x1ed   : > { %v1150_v53 = vcvt.s32.f32 %v1146_v24  ;;  %v1143_v62 = vxor.u32 %v1139_v36, %v1135_v58 }
 0x1ee   : > { %v1287_v5 = vxor.u32 %v1283_v47, %v1279_v21  ;;  %v1051_v14 = vmul.f32 5.9604645e-08, %v1047_v55 }
 0x1ef   : > { %v1154_v11 = vmul.f32 5.9604645e-08, %v1150_v53  ;;  %v1147_v8 = vshrl.u32 %v1143_v62, 8  ;;  %v1251_v53 = vshrl.u32 %v1247_v26, 8 }
 0x1f1   : > { %v2047_v27 = vld [vmem:[%s2028_s12] sm:$0xff]  ;;  %v401_v12 = vpop.f32.mrb[4].mxu1  ;;  %v1158_v58 = vadd.f32 %v1154_v11, %v1106_v9  ;;  %v1151_v24 = vcvt.s32.f32 %v1147_v8  ;;  %v1255_v3 = vcvt.s32.f32 %v1251_v53 }
 0x1f2   : > { %v627_v1 = vmax.f32 %v2047_v27, 0.0  ;;  %1447 = vst.msk [vmem:[%s2028_s12 + $0x8] sm:$0xff] %vm300_vm2, %v401_v12  ;;  %v1513_v40 = vpop.f32.mrb[5].mxu1  ;;  %v1195_v12 = vxor.u32 %v1191_v56, %v1187_v33  ;;  %v1464_v56 = vadd.f32 -6.0, %v1313_v42 }
 0x1f3   : > { %v404_v7 = vpop.f32.mrb[6].mxu1  ;;  %v1463_v40 = vadd.f32 -6.0, %v1982_v15  ;;  %v1155_v48 = vmul.f32 5.9604645e-08, %v1151_v24 }
 0x1f4   : > { %v631_v22 = vmul.f32 0.01, %v627_v1  ;;  %v1514_v23 = vpop.f32.mrb[7].mxu1  ;;  %v1291_v1 = vmul.u32 2221713035, %v1287_v5  ;;  %v1206_v7 = vmul.f32 5.9604645e-08, %v1202_v13 }
 0x1f5   : > { %v1199_v32 = vshrl.u32 %v1195_v12, 8  ;;  %v1103_v23 = vmul.f32 5.9604645e-08, %v1099_v17  ;;  %v1259_v12 = vmul.f32 5.9604645e-08, %v1255_v3 }
 0x1f6   : > { %v2052_v34 = vadd.f32 4e-06, %v631_v22  ;;  %v1055_v22 = vadd.f32 %v1051_v14, %v1003_v38  ;;  %v1295_v28 = vshrl.u32 %v1291_v1, 16  ;;  %v1210_v6 = vadd.f32 %v1206_v7, %v1158_v58 }
 0x1f7   : > { %v1203_v46 = vcvt.s32.f32 %v1199_v32 }
 0x1f8   : > { %1599 = vrsqrt.f32 %v2052_v34  ;;  %vm641_vm3 = vcmp.eq.f32.partialorder %v2052_v34, inf  ;;  %v644_v33 = vand.u32 2147483648, %v2052_v34  ;;  %vm643_vm4 = vcmp.eq.f32.partialorder %v2052_v34, 0.0 }
 0x1f9   : > { %v2057_v49 = vld [vmem:[%s2028_s12 + $0x8] sm:$0xff]  ;;  %v508_v51 = vpop.f32.mrb[8].mxu1  ;;  %v1107_v30 = vadd.f32 %v1103_v23, %v1055_v22  ;;  %v1299_v54 = vxor.u32 %v1295_v28, %v1291_v1  ;;  %v1262_v59 = vadd.f32 %v1258_v25, %v1210_v6  ;;  %v1207_v0 = vmul.f32 5.9604645e-08, %v1203_v46 }
 0x1fa   : > { %v628_v57 = vmax.f32 %v2057_v49, 0.0  ;;  %1454 = vst.msk [vmem:[%s2028_s12 + $0x10] sm:$0xff] %vm300_vm2, %v508_v51  ;;  %v1525_v50 = vpop.f32.mrb[9].mxu1 }
 0x1fb   : > { %v511_v2 = vpop.f32.mrb[10].mxu1  ;;  %v1303_v5 = vshrl.u32 %v1299_v54, 8 }
 0x1fc   : > { %v632_v4 = vmul.f32 0.01, %v628_v57  ;;  %v1526_v10 = vpop.f32.mrb[11].mxu1  ;;  %v1310_v57 = vmul.f32 5.9604645e-08, %v1306_v61 }
 0x1fd   : > { %v1307_v38 = vcvt.s32.f32 %v1303_v5 }
 0x1fe   : > { %v2065_v16 = vadd.f32 4e-06, %v632_v4  ;;  %v1314_v10 = vadd.f32 %v1310_v57, %v1262_v59 }
 0x1ff   : > { %v1311_v41 = vmul.f32 5.9604645e-08, %v1307_v38 }
 0x200   : > { %1601 = vrsqrt.f32 %v2065_v16  ;;  %vm648_vm5 = vcmp.eq.f32.partialorder %v2065_v16, inf  ;;  %v651_v4 = vand.u32 2147483648, %v2065_v16  ;;  %vm650_vm6 = vcmp.eq.f32.partialorder %v2065_v16, 0.0 }
 0x201   : > { %v2070_v43 = vld [vmem:[%s2028_s12 + $0x10] sm:$0xff]  ;;  %v615_v19 = vpop.f32.mrb[12].mxu1  ;;  %v1465_v20 = vadd.f32 -6.0, %v1314_v10 }
 0x202   : > { %v1600_v52 = vpop.eup %1599  ;;  %v629_v21 = vmax.f32 %v2070_v43, 0.0  ;;  %1461 = vst.msk [vmem:[%s2028_s12 + $0x18] sm:$0xff] %vm300_vm2, %v615_v19  ;;  %v1537_v35 = vpop.f32.mrb[13].mxu1 }
 0x203   : > { %v640_v15 = vmul.f32 %v1600_v52, %v2052_v34  ;;  %v618_v29 = vpop.f32.mrb[14].mxu1 }
 0x204   : > { %v633_v44 = vmul.f32 0.01, %v629_v21  ;;  %v1538_v36 = vpop.f32.mrb[15].mxu1 }
 0x205   : > { %v642_v45 = vsel %vm641_vm3, %v2052_v34, %v640_v15  ;;  %v1159_v34 = vadd.f32 %v1155_v48, %v1107_v30 }
 0x206   : > { %v645_v47 = vsel %vm643_vm4, %v644_v33, %v642_v45  ;;  %v637_v39 = vadd.f32 4e-06, %v633_v44 }
 0x207   : > { %v1320_v51 = vmul.f32 %v1463_v40, %v645_v47  ;;  %v1211_v14 = vadd.f32 %v1207_v0, %v1159_v34 }
 0x208   : > { %1603 = vrsqrt.f32 %v637_v39  ;;  %vm655_vm7 = vcmp.eq.f32.partialorder %v637_v39, inf  ;;  %vm657_vm8 = vcmp.eq.f32.partialorder %v637_v39, 0.0 }
 0x209   : > { %v1324_v55 = vadd.f32 %v1320_v51, %v2047_v27  ;;  %v626_v50 = vld [vmem:[%s2028_s12 + $0x18] sm:$0xff]  ;;  %v1263_v40 = vadd.f32 %v1259_v12, %v1211_v14 }
 0x20a   : > { %v1602_v31 = vpop.eup %1601  ;;  %v630_v62 = vmax.f32 %v626_v50, 0.0 }
 0x20b   : > { %v1328_v37 = vmax.f32 %v1324_v55, 0.0  ;;  %v647_v2 = vmul.f32 %v1602_v31, %v2065_v16  ;;  %v1315_v32 = vadd.f32 %v1311_v41, %v1263_v40 }
 0x20c   : > { %v634_v60 = vmul.f32 0.01, %v630_v62 }
 0x20d   : > { %v1332_v27 = vmin.f32 %v1328_v37, 1.0  ;;  %v649_v9 = vsel %vm648_vm5, %v2065_v16, %v647_v2  ;;  %v658_v16 = vand.u32 2147483648, %v637_v39  ;;  %v1466_v23 = vadd.f32 -6.0, %v1315_v32 }
 0x20e   : > { %v652_v63 = vsel %vm650_vm6, %v651_v4, %v649_v9  ;;  %v638_v11 = vadd.f32 4e-06, %v634_v60 }
 0x20f   : > { %1336 = vst.msk [vmem:[%s2028_s12] sm:$0xff] %vm300_vm2, %v1332_v27  ;;  %v1321_v13 = vmul.f32 %v1464_v56, %v652_v63 }
 0x210   : > { %1605 = vrsqrt.f32 %v638_v11  ;;  %vm662_vm9 = vcmp.eq.f32.partialorder %v638_v11, inf  ;;  %v665_v24 = vand.u32 2147483648, %v638_v11  ;;  %vm664_vm10 = vcmp.eq.f32.partialorder %v638_v11, 0.0 }
 0x211   : > { %v1325_v17 = vadd.f32 %v1321_v13, %v2057_v49 }
 0x212   : > { %v1604_v8 = vpop.eup %1603 }
 0x213   : > { %v1329_v18 = vmax.f32 %v1325_v17, 0.0  ;;  %v654_v1 = vmul.f32 %v1604_v8, %v637_v39 }
 0x215   : > { %v1333_v42 = vmin.f32 %v1329_v18, 1.0  ;;  %v656_v58 = vsel %vm655_vm7, %v637_v39, %v654_v1 }
 0x216   : > { %v659_v7 = vsel %vm657_vm8, %v658_v16, %v656_v58 }
 0x217   : > { %1337 = vst.msk [vmem:[%s2028_s12 + $0x8] sm:$0xff] %vm300_vm2, %v1333_v42  ;;  %v1322_v19 = vmul.f32 %v1465_v20, %v659_v7 }
 0x219   : > { %v1326_v49 = vadd.f32 %v1322_v19, %v2070_v43 }
 0x21a   : > { %v1606_v52 = vpop.eup %1605 }
 0x21b   : > { %v1330_v21 = vmax.f32 %v1326_v49, 0.0  ;;  %v661_v22 = vmul.f32 %v1606_v52, %v638_v11 }
 0x21d   : > { %v1334_v35 = vmin.f32 %v1330_v21, 1.0  ;;  %v663_v15 = vsel %vm662_vm9, %v638_v11, %v661_v22 }
 0x21e   : > { %v666_v25 = vsel %vm664_vm10, %v665_v24, %v663_v15 }
 0x21f   : > { %1338 = vst.msk [vmem:[%s2028_s12 + $0x10] sm:$0xff] %vm300_vm2, %v1334_v35  ;;  %v1323_v26 = vmul.f32 %v1466_v23, %v666_v25 }
 0x221   : > { %v1327_v28 = vadd.f32 %v1323_v26, %v626_v50 }
 0x223   : > { %v1331_v43 = vmax.f32 %v1327_v28, 0.0 }
 0x225   : > { %v1335_v29 = vmin.f32 %v1331_v43, 1.0 }
 0x227   : > { %1339 = vst.msk [vmem:[%s2028_s12 + $0x18] sm:$0xff] %vm300_vm2, %v1335_v29 }
 0x228   : > { %1650 = shalt.err (!%p1647_p2)
}
 0x229   : > { %s1651_s7 = scalar_lea.hbm %s2100_s24, 512  ;;  %s1655_s16 = scalar_lea.hbm %s2152_s4, 1024 }
 0x22a   : > { %p1652_p4 = scmp.ne.s32.totalorder %s2100_s24, %s1651_s7  ;;  %p1656_p9 = scmp.lt.u32.totalorder %s2100_s24, %s2152_s4 }
 0x22b   : > { %p1657_p1 = scmp.lt.u32.totalorder %s1655_s16, %s1651_s7  ;;  %p1659_p6 = scmp.lt.u32.totalorder %s1651_s7, %s2100_s24 }
 0x22c   : > { %p1653_p5 = pnand %p1652_p4, %p2159_p11 }
 0x22d   : > { %p1658_p3 = por %p1657_p1, %p1656_p9 }
 0x22e   : > { %p1654_p7 = pneg %p1653_p5 }
 0x22f   : > { %p1660_p12 = por %p1659_p6, %p1658_p3 }
 0x231   : > { %p1661_p13 = pnand %p1660_p12, %p1654_p7 }
 0x233   : > { %1664 = shalt.err (!%p1661_p13)
}
 0x234   : > { %s1711_s27 = smov 128   ;;  %s1712_s12 = smov 8  }
 0x235   : > { %1541 = dma.vmem_to_hbm [thread:$0]  (%p2159_p11), %s2102_s13, 512, %s2100_s24, %s1341_s26, %s1711_s27, %s1711_s27, %s1712_s12  }
 0x236 PF: > { %s1369_s14 = sand.u32 1, %s1691_s17   ;;  %p2160_p8 = scmp.ne.s32.totalorder %s2157_s29, 0 }
 0x237   : > { %p2161_p10 = scmp.ge.s32.totalorder %s1703_s20, 2  ;;  %s1370_s21 = scalar_lea.sflag [#allocation6], %s1369_s14 }
 0x239   : > { %p1548_p0 = pnand %p2161_p10, %p2160_p8 }
 0x23b   : > { %1686 = dma.done.wait (!%p1548_p0), %s1370_s21, 512  }
 0x23c   : > { %1688 = vsyncadd (!%p1548_p0), %s1370_s21, 4294966784  ;;  %p18_p2 = scmp.ge.s32.totalorder %s1766_s22, 4   ;;  %s2162_s17 = smov %s1695_s18 }
 0x23d   : > { %s2163_s18 = smov %s1699_s19  ;;  %s2164_s19 = smov %s1778_s25 }
 0x23e   : > { %s2165_s20 = smov %s1766_s22  ;;  %20 = sbr.rel (!%p18_p2) target bundleno = 7 (0x7), region = 83 }
 0x245   :  { %1375 = vsyncpa [#allocation5], 1 }
 0x246   :  { %1377 = vsyncpa [#allocation5 + $0x1], 1 }
 0x247   :  { %1378 = vsyncpa [#allocation6], 1 }
 0x248   :  { %1380 = vsyncpa [#allocation6 + $0x1], 1 }

</bundles_post_ra>
